<compile_context>
chip_gen: v5e
topology: v5e:2x2
jax: 0.10.0
libtpu: 0.0.40
codegen_flags: <defaults>
</compile_context>

<pallas_src>
import numpy as np
import jax
import jax.numpy as jnp
from jax.experimental import pallas as pl
from jax.experimental.pallas import tpu as pltpu


# ----------------------------------------------------------------------------
# synthetic "options" (small shapes)
# ----------------------------------------------------------------------------
INCHANS = 32           # encoder output channels (synthetic, stands in for 2048)
PRESET_CHANNELS = 16   # options.preset_channels
SET_POINTS = 4         # options.set_points
POSTSET_CHANNELS = 32  # options.postset_channels
STACK_SIZE = 2         # options.stack_size
NUM_CLASSES = 2        # options.num_classes -> classifier out_channels = 1
SE_REDUCTION = 4


# ----------------------------------------------------------------------------
# fused Pallas kernel: one grid step == one stack group (STACK_SIZE images)
# ----------------------------------------------------------------------------
def _morphset_fused_kernel(
    x_ref,                                  # (1, STACK*H*W, Cin) f32
    gsel_ref,                               # (9, STACK*Ho*Wo, STACK*H*W) bf16 conv-tap gathers
    pool_hw_ref, bcast_hw_ref,              # (STACK, STACK*H*W), (STACK*H*W, STACK) bf16
    pool_ho_ref, bcast_ho_ref,              # (STACK, STACK*Ho*Wo), (STACK*Ho*Wo, STACK) bf16
    se1w1, se1b1, se1w2, se1b2,             # SE weights bf16, biases f32
    pre_w, pre_b,
    se2w1, se2b1, se2w2, se2b2,
    conv_w, conv_b,                         # (9, Cp, Cs) bf16, (1, Cs) f32
    se3w1, se3b1, se3w2, se3b2,
    post_w, post_b,
    se4w1, se4b1, se4w2, se4b2,
    cls_w, cls_b,                           # (STACK, Cq, n_out) bf16, (1, n_out) f32
    o_ref,                                  # (1, 1, n_out)
):
    f32, bf16 = jnp.float32, jnp.bfloat16

    def mm(a, b):
        # MXU matmul: bf16 operands (fast path on v6e/v7x), f32 accumulation.
        # Weights / selectors are already bf16; astype is a no-op for them.
        return jnp.dot(a.astype(bf16), b.astype(bf16), preferred_element_type=f32)

    def se_gate(s, w1, b1, w2, b2):
        # SE excitation on the squeezed per-image features (STACK, C):
        # FC -> ReLU -> FC -> sigmoid.  Elementwise math stays f32 (v5e-safe).
        h = jnp.maximum(mm(s, w1[...]) + b1[...], 0.0)
        return jax.nn.sigmoid(mm(h, w2[...]) + b2[...])

    pool_hw, bcast_hw = pool_hw_ref[...], bcast_hw_ref[...]
    pool_ho, bcast_ho = pool_ho_ref[...], bcast_ho_ref[...]

    x = x_ref[0].astype(f32)                                   # (STACK*HW, Cin)

    # --- SE1: squeeze (per-image spatial mean via selection matmul) + scale --
    s1 = mm(pool_hw, x)                                        # (STACK, Cin)
    z1 = se_gate(s1, se1w1, se1b1, se1w2, se1b2)
    x = x * mm(bcast_hw, z1)

    # --- preset: 1x1 conv == per-pixel matmul ---
    x = mm(x, pre_w[...]) + pre_b[...]                         # (STACK*HW, Cp)

    # --- SE2: squeeze reuses s1*z1 (mean commutes with the SE1 channel scale
    #     and with the 1x1 conv), so no full-spatial pool matmul is needed ---
    s2 = mm(s1 * z1, pre_w[...]) + pre_b[...]                  # == pool_hw @ x
    z2 = se_gate(s2, se2w1, se2b1, se2w2, se2b2)
    x = x * mm(bcast_hw, z2)

    # --- abl_conv: 3x3 / stride 2 / pad 1, as 9 accumulated taps.  Each tap is
    #     a (gather-as-matmul over flattened spatial) @ (per-tap weight block);
    #     the 9x im2col tensor never exists outside VMEM/vregs. ---
    n_taps, rows_out = gsel_ref.shape[0], gsel_ref.shape[1]
    cs = conv_w.shape[2]
    xb = x.astype(bf16)                                        # cast once, reused by 9 taps
    acc = jnp.zeros((rows_out, cs), f32)
    for t in range(n_taps):
        xt = jnp.dot(gsel_ref[t], xb, preferred_element_type=f32)   # (S*HoWo, Cp)
        acc = acc + mm(xt, conv_w[t])                                # (S*HoWo, Cs)
    x = acc + conv_b[...]

    # --- SE3 ---
    s3 = mm(pool_ho, x)                                        # (STACK, Cs)
    z3 = se_gate(s3, se3w1, se3b1, se3w2, se3b2)
    x = x * mm(bcast_ho, z3)

    # --- postset: 1x1 conv ---
    x = mm(x, post_w[...]) + post_b[...]                       # (STACK*HoWo, Cq)

    # --- SE4 fused with stack-regroup + GAP:
    #     GAP(x * bcast(z4)) == GAP(x) * z4, and GAP(x) is exactly SE4's own
    #     squeeze, so the scaled full tensor is never materialised. ---
    s4 = mm(pool_ho, x)                                        # (STACK, Cq) == GAP(x)
    z4 = se_gate(s4, se4w1, se4b1, se4w2, se4b2)
    feat = s4 * z4                                             # pooled, SE4-scaled features

    # --- classifier: logits = concat_s(feat_s) @ W + b, done as per-stack
    #     (row) @ (weight block) so no reshape / transpose is needed. ---
    stack, n_out = cls_w.shape[0], cls_w.shape[2]
    y = jnp.zeros((1, n_out), f32)
    for s in range(stack):
        y = y + mm(feat[s:s + 1, :], cls_w[s])                 # (1, n_out)
    # final result is tiny (n_out=1); the single masked store is irrelevant.
    o_ref[0] = (y + cls_b[...]).astype(o_ref.dtype)


# ----------------------------------------------------------------------------
# constant selection matrices (built once on the host)
# ----------------------------------------------------------------------------
def make_selectors(H, W, stack):
    """Selection matrices expressing the SE squeeze/broadcast and the 3x3/s2/p1
    conv gather as plain matmuls.  Entries are 0/1 or 1/2^k, so bf16 storage is
    exact."""
    HW = H * W
    Ho = (H + 2 - 3) // 2 + 1
    Wo = (W + 2 - 3) // 2 + 1
    HoWo = Ho * Wo

    # per-image gather matrix of each 3x3 tap (t = kh*3 + kw):
    #   g[t, ho*Wo+wo, hi*W+wi] = 1 with hi = 2*ho+kh-1, wi = 2*wo+kw-1 (0 if padded)
    g = np.zeros((9, HoWo, HW), np.float32)
    for kh in range(3):
        for kw in range(3):
            t = kh * 3 + kw
            for ho in range(Ho):
                hi = 2 * ho + kh - 1
                if not (0 <= hi < H):
                    continue
                for wo in range(Wo):
                    wi = 2 * wo + kw - 1
                    if 0 <= wi < W:
                        g[t, ho * Wo + wo, hi * W + wi] = 1.0

    eye = np.eye(stack, dtype=np.float32)
    gsel = np.stack([np.kron(eye, g[t]) for t in range(9)])      # (9, S*HoWo, S*HW)
    pool_hw = np.kron(eye, np.full((1, HW), 1.0 / HW, np.float32))
    bcast_hw = np.kron(eye, np.ones((HW, 1), np.float32))
    pool_ho = np.kron(eye, np.full((1, HoWo), 1.0 / HoWo, np.float32))
    bcast_ho = np.kron(eye, np.ones((HoWo, 1), np.float32))

    cvt = lambda a: jnp.asarray(a, dtype=jnp.bfloat16)           # exact here
    return {
        "gsel": cvt(gsel),
        "pool_hw": cvt(pool_hw), "bcast_hw": cvt(bcast_hw),
        "pool_ho": cvt(pool_ho), "bcast_ho": cvt(bcast_ho),
    }


# ----------------------------------------------------------------------------
# parameter init (deterministic, synthetic); MXU weight operands stored bf16
# ----------------------------------------------------------------------------
def _dense(key, fan_in, fan_out):
    kw, kb = jax.random.split(key)
    w = jax.random.normal(kw, (fan_in, fan_out), jnp.float32) / jnp.sqrt(float(fan_in))
    b = 0.01 * jax.random.normal(kb, (1, fan_out), jnp.float32)
    return w, b


def _se_params(key, c, r=SE_REDUCTION):
    k1, k2 = jax.random.split(key)
    cr = max(c // r, 1)
    w1, b1 = _dense(k1, c, cr)
    w2, b2 = _dense(k2, cr, c)
    return {"w1": w1.astype(jnp.bfloat16), "b1": b1,
            "w2": w2.astype(jnp.bfloat16), "b2": b2}


def init_params(key):
    ks = jax.random.split(key, 9)
    cp, cs, cq = PRESET_CHANNELS, PRESET_CHANNELS * SET_POINTS, POSTSET_CHANNELS
    n_out = 1 if NUM_CLASSES == 2 else NUM_CLASSES
    bf = jnp.bfloat16
    p = {}
    p["se1"] = _se_params(ks[0], INCHANS)
    w, b = _dense(ks[1], INCHANS, cp)
    p["preset_w"], p["preset_b"] = w.astype(bf), b
    p["se2"] = _se_params(ks[2], cp)
    # abl_conv weights: conv_w[kh*3 + kw, cin, cout] == W_torch[cout, cin, kh, kw]
    w, b = _dense(ks[3], 9 * cp, cs)
    p["conv_w"], p["conv_b"] = w.reshape(9, cp, cs).astype(bf), b
    p["se3"] = _se_params(ks[4], cs)
    w, b = _dense(ks[5], cs, cq)
    p["postset_w"], p["postset_b"] = w.astype(bf), b
    p["se4"] = _se_params(ks[6], cq)
    # classifier: cls_w[s, c, n] == W_torch[n, s*Cq + c]
    w, b = _dense(ks[7], cq * STACK_SIZE, n_out)
    p["cls_w"], p["cls_b"] = w.reshape(STACK_SIZE, cq, n_out).astype(bf), b
    return p


# ----------------------------------------------------------------------------
# forward pass (mirrors MorphSet.forward, ablation branch) — single pallas_call
# ----------------------------------------------------------------------------
def morphset_forward(params, sel, x_nchw):
    B, cin, H, W = x_nchw.shape
    bp = B // STACK_SIZE
    n_out = params["cls_b"].shape[1]

    # one-time layout plumbing at the kernel boundary:
    # NCHW -> NHWC -> (stack groups, stack*H*W rows, channels)
    x3 = jnp.transpose(x_nchw, (0, 2, 3, 1)).reshape(bp, STACK_SIZE * H * W, cin)

    se = lambda q: (params[q]["w1"], params[q]["b1"], params[q]["w2"], params[q]["b2"])
    args = (
        x3,
        sel["gsel"], sel["pool_hw"], sel["bcast_hw"],
        sel["pool_ho"], sel["bcast_ho"],
        *se("se1"),
        params["preset_w"], params["preset_b"],
        *se("se2"),
        params["conv_w"], params["conv_b"],
        *se("se3"),
        params["postset_w"], params["postset_b"],
        *se("se4"),
        params["cls_w"], params["cls_b"],
    )

    # x is blocked per stack group; everything else is a small constant block
    # (same block index every step -> fetched once, stays resident in VMEM).
    in_specs = [pl.BlockSpec((1,) + x3.shape[1:], lambda i: (i, 0, 0))]
    for a in args[1:]:
        in_specs.append(pl.BlockSpec(a.shape, lambda i, nd=a.ndim: (0,) * nd))

    out = pl.pallas_call(
        _morphset_fused_kernel,
        out_shape=jax.ShapeDtypeStruct((bp, 1, n_out), jnp.float32),
        grid=(bp,),
        in_specs=in_specs,
        out_specs=pl.BlockSpec((1, 1, n_out), lambda i: (i, 0, 0)),
        compiler_params=pltpu.CompilerParams(dimension_semantics=("parallel",)),
    )(*args)

    # match the PyTorch output layout (B', n_out, 1, 1)
    return out.reshape(bp, n_out, 1, 1)


# ----------------------------------------------------------------------------
if __name__ == "__main__":
    B, H, W = 4, 8, 8
    key = jax.random.PRNGKey(0)
    # input = encoder feature map, NCHW like PyTorch: (batch, inchans, H, W)
    x = jax.random.normal(key, (B, INCHANS, H, W), jnp.float32)

    params = init_params(jax.random.PRNGKey(42))
    sel = make_selectors(H, W, STACK_SIZE)

    fwd = jax.jit(morphset_forward)
    out = jax.block_until_ready(fwd(params, sel, x))

    assert out.shape == (B // STACK_SIZE, 1, 1, 1), out.shape
    assert bool(jnp.all(jnp.isfinite(out)))
    print("KERNEL_OK")
</pallas_src>

<mosaic_0001>
module attributes {stable_mosaic.version = 11 : i64} {
  func.func @_morphset_fused_kernel(%arg0: i32, %arg1: memref<1x128x32xf32, #tpu.memory_space<vmem>>, %arg2: memref<9x32x128xbf16, #tpu.memory_space<vmem>>, %arg3: memref<2x128xbf16, #tpu.memory_space<vmem>>, %arg4: memref<128x2xbf16, #tpu.memory_space<vmem>>, %arg5: memref<2x32xbf16, #tpu.memory_space<vmem>>, %arg6: memref<32x2xbf16, #tpu.memory_space<vmem>>, %arg7: memref<32x8xbf16, #tpu.memory_space<vmem>>, %arg8: memref<1x8xf32, #tpu.memory_space<vmem>>, %arg9: memref<8x32xbf16, #tpu.memory_space<vmem>>, %arg10: memref<1x32xf32, #tpu.memory_space<vmem>>, %arg11: memref<32x16xbf16, #tpu.memory_space<vmem>>, %arg12: memref<1x16xf32, #tpu.memory_space<vmem>>, %arg13: memref<16x4xbf16, #tpu.memory_space<vmem>>, %arg14: memref<1x4xf32, #tpu.memory_space<vmem>>, %arg15: memref<4x16xbf16, #tpu.memory_space<vmem>>, %arg16: memref<1x16xf32, #tpu.memory_space<vmem>>, %arg17: memref<9x16x64xbf16, #tpu.memory_space<vmem>>, %arg18: memref<1x64xf32, #tpu.memory_space<vmem>>, %arg19: memref<64x16xbf16, #tpu.memory_space<vmem>>, %arg20: memref<1x16xf32, #tpu.memory_space<vmem>>, %arg21: memref<16x64xbf16, #tpu.memory_space<vmem>>, %arg22: memref<1x64xf32, #tpu.memory_space<vmem>>, %arg23: memref<64x32xbf16, #tpu.memory_space<vmem>>, %arg24: memref<1x32xf32, #tpu.memory_space<vmem>>, %arg25: memref<32x8xbf16, #tpu.memory_space<vmem>>, %arg26: memref<1x8xf32, #tpu.memory_space<vmem>>, %arg27: memref<8x32xbf16, #tpu.memory_space<vmem>>, %arg28: memref<1x32xf32, #tpu.memory_space<vmem>>, %arg29: memref<2x32x1xbf16, #tpu.memory_space<vmem>>, %arg30: memref<1x1xf32, #tpu.memory_space<vmem>>, %arg31: memref<1x1x1xf32, #tpu.memory_space<vmem>>) attributes {dimension_semantics = [#tpu.dimension_semantics<parallel>], iteration_bounds = array<i64: 2>, scalar_prefetch = 0 : i64, scratch_operands = 0 : i64, tpu.core_type = #tpu.core_type<tc>, window_params = [{transform_indices = @transform_0, window_bounds = array<i64: 1, 128, 32>}, {pipeline_mode = #tpu.pipeline_mode<synchronous>, transform_indices = @transform_1, window_bounds = array<i64: 9, 32, 128>}, {pipeline_mode = #tpu.pipeline_mode<synchronous>, transform_indices = @transform_2, window_bounds = array<i64: 2, 128>}, {pipeline_mode = #tpu.pipeline_mode<synchronous>, transform_indices = @transform_3, window_bounds = array<i64: 128, 2>}, {pipeline_mode = #tpu.pipeline_mode<synchronous>, transform_indices = @transform_4, window_bounds = array<i64: 2, 32>}, {pipeline_mode = #tpu.pipeline_mode<synchronous>, transform_indices = @transform_5, window_bounds = array<i64: 32, 2>}, {pipeline_mode = #tpu.pipeline_mode<synchronous>, transform_indices = @transform_6, window_bounds = array<i64: 32, 8>}, {pipeline_mode = #tpu.pipeline_mode<synchronous>, transform_indices = @transform_7, window_bounds = array<i64: 1, 8>}, {pipeline_mode = #tpu.pipeline_mode<synchronous>, transform_indices = @transform_8, window_bounds = array<i64: 8, 32>}, {pipeline_mode = #tpu.pipeline_mode<synchronous>, transform_indices = @transform_9, window_bounds = array<i64: 1, 32>}, {pipeline_mode = #tpu.pipeline_mode<synchronous>, transform_indices = @transform_10, window_bounds = array<i64: 32, 16>}, {pipeline_mode = #tpu.pipeline_mode<synchronous>, transform_indices = @transform_11, window_bounds = array<i64: 1, 16>}, {pipeline_mode = #tpu.pipeline_mode<synchronous>, transform_indices = @transform_12, window_bounds = array<i64: 16, 4>}, {pipeline_mode = #tpu.pipeline_mode<synchronous>, transform_indices = @transform_13, window_bounds = array<i64: 1, 4>}, {pipeline_mode = #tpu.pipeline_mode<synchronous>, transform_indices = @transform_14, window_bounds = array<i64: 4, 16>}, {pipeline_mode = #tpu.pipeline_mode<synchronous>, transform_indices = @transform_15, window_bounds = array<i64: 1, 16>}, {pipeline_mode = #tpu.pipeline_mode<synchronous>, transform_indices = @transform_16, window_bounds = array<i64: 9, 16, 64>}, {pipeline_mode = #tpu.pipeline_mode<synchronous>, transform_indices = @transform_17, window_bounds = array<i64: 1, 64>}, {pipeline_mode = #tpu.pipeline_mode<synchronous>, transform_indices = @transform_18, window_bounds = array<i64: 64, 16>}, {pipeline_mode = #tpu.pipeline_mode<synchronous>, transform_indices = @transform_19, window_bounds = array<i64: 1, 16>}, {pipeline_mode = #tpu.pipeline_mode<synchronous>, transform_indices = @transform_20, window_bounds = array<i64: 16, 64>}, {pipeline_mode = #tpu.pipeline_mode<synchronous>, transform_indices = @transform_21, window_bounds = array<i64: 1, 64>}, {pipeline_mode = #tpu.pipeline_mode<synchronous>, transform_indices = @transform_22, window_bounds = array<i64: 64, 32>}, {pipeline_mode = #tpu.pipeline_mode<synchronous>, transform_indices = @transform_23, window_bounds = array<i64: 1, 32>}, {pipeline_mode = #tpu.pipeline_mode<synchronous>, transform_indices = @transform_24, window_bounds = array<i64: 32, 8>}, {pipeline_mode = #tpu.pipeline_mode<synchronous>, transform_indices = @transform_25, window_bounds = array<i64: 1, 8>}, {pipeline_mode = #tpu.pipeline_mode<synchronous>, transform_indices = @transform_26, window_bounds = array<i64: 8, 32>}, {pipeline_mode = #tpu.pipeline_mode<synchronous>, transform_indices = @transform_27, window_bounds = array<i64: 1, 32>}, {pipeline_mode = #tpu.pipeline_mode<synchronous>, transform_indices = @transform_28, window_bounds = array<i64: 2, 32, 1>}, {pipeline_mode = #tpu.pipeline_mode<synchronous>, transform_indices = @transform_29, window_bounds = array<i64: 1, 1>}, {transform_indices = @transform_30, window_bounds = array<i64: 1, 1, 1>}]} {
    %c0 = arith.constant 0 : index
    %c0_0 = arith.constant 0 : index
    %0 = vector.load %arg3[%c0, %c0_0] : memref<2x128xbf16, #tpu.memory_space<vmem>>, vector<2x128xbf16>
    %c0_1 = arith.constant 0 : index
    %c0_2 = arith.constant 0 : index
    %1 = vector.load %arg4[%c0_1, %c0_2] : memref<128x2xbf16, #tpu.memory_space<vmem>>, vector<128x2xbf16>
    %c0_3 = arith.constant 0 : index
    %c0_4 = arith.constant 0 : index
    %2 = vector.load %arg5[%c0_3, %c0_4] : memref<2x32xbf16, #tpu.memory_space<vmem>>, vector<2x32xbf16>
    %c0_5 = arith.constant 0 : index
    %c0_6 = arith.constant 0 : index
    %3 = vector.load %arg6[%c0_5, %c0_6] : memref<32x2xbf16, #tpu.memory_space<vmem>>, vector<32x2xbf16>
    %c0_7 = arith.constant 0 : index
    %c0_8 = arith.constant 0 : index
    %c0_9 = arith.constant 0 : index
    %4 = vector.load %arg1[%c0_7, %c0_8, %c0_9] : memref<1x128x32xf32, #tpu.memory_space<vmem>>, vector<1x128x32xf32>
    %5 = vector.shape_cast %4 : vector<1x128x32xf32> to vector<128x32xf32>
    %6 = arith.truncf %5 : vector<128x32xf32> to vector<128x32xbf16>
    %cst = arith.constant dense<0.000000e+00> : vector<2x32xf32>
    %7 = tpu.matmul %0, %6, %cst {dimension_numbers = #tpu.dot_dimension_numbers<[1], [0], [0], [1], [0, 0, 1, 1], [], []>} : vector<2x128xbf16>, vector<128x32xbf16>, vector<2x32xf32> -> vector<2x32xf32>
    %c0_10 = arith.constant 0 : index
    %c0_11 = arith.constant 0 : index
    %8 = vector.load %arg7[%c0_10, %c0_11] : memref<32x8xbf16, #tpu.memory_space<vmem>>, vector<32x8xbf16>
    %9 = arith.truncf %7 : vector<2x32xf32> to vector<2x32xbf16>
    %cst_12 = arith.constant dense<0.000000e+00> : vector<2x8xf32>
    %10 = tpu.matmul %9, %8, %cst_12 {dimension_numbers = #tpu.dot_dimension_numbers<[1], [0], [0], [1], [0, 0, 1, 1], [], []>} : vector<2x32xbf16>, vector<32x8xbf16>, vector<2x8xf32> -> vector<2x8xf32>
    %c0_13 = arith.constant 0 : index
    %c0_14 = arith.constant 0 : index
    %11 = vector.load %arg8[%c0_13, %c0_14] : memref<1x8xf32, #tpu.memory_space<vmem>>, vector<1x8xf32>
    %12 = vector.broadcast %11 : vector<1x8xf32> to vector<2x8xf32>
    %13 = arith.addf %10, %12 : vector<2x8xf32>
    %cst_15 = arith.constant 0.000000e+00 : f32
    %14 = vector.broadcast %cst_15 : f32 to vector<2x8xf32>
    %15 = arith.maximumf %13, %14 : vector<2x8xf32>
    %c0_16 = arith.constant 0 : index
    %c0_17 = arith.constant 0 : index
    %16 = vector.load %arg9[%c0_16, %c0_17] : memref<8x32xbf16, #tpu.memory_space<vmem>>, vector<8x32xbf16>
    %17 = arith.truncf %15 : vector<2x8xf32> to vector<2x8xbf16>
    %cst_18 = arith.constant dense<0.000000e+00> : vector<2x32xf32>
    %18 = tpu.matmul %17, %16, %cst_18 {dimension_numbers = #tpu.dot_dimension_numbers<[1], [0], [0], [1], [0, 0, 1, 1], [], []>} : vector<2x8xbf16>, vector<8x32xbf16>, vector<2x32xf32> -> vector<2x32xf32>
    %c0_19 = arith.constant 0 : index
    %c0_20 = arith.constant 0 : index
    %19 = vector.load %arg10[%c0_19, %c0_20] : memref<1x32xf32, #tpu.memory_space<vmem>>, vector<1x32xf32>
    %20 = vector.broadcast %19 : vector<1x32xf32> to vector<2x32xf32>
    %21 = arith.addf %18, %20 : vector<2x32xf32>
    %22 = arith.negf %21 : vector<2x32xf32>
    %23 = math.exp %22 : vector<2x32xf32>
    %cst_21 = arith.constant 1.000000e+00 : f32
    %24 = vector.broadcast %cst_21 : f32 to vector<2x32xf32>
    %25 = arith.addf %24, %23 : vector<2x32xf32>
    %26 = arith.divf %24, %25 : vector<2x32xf32>
    %27 = arith.truncf %26 : vector<2x32xf32> to vector<2x32xbf16>
    %cst_22 = arith.constant dense<0.000000e+00> : vector<128x32xf32>
    %28 = tpu.matmul %1, %27, %cst_22 {dimension_numbers = #tpu.dot_dimension_numbers<[1], [0], [0], [1], [0, 0, 1, 1], [], []>} : vector<128x2xbf16>, vector<2x32xbf16>, vector<128x32xf32> -> vector<128x32xf32>
    %29 = arith.mulf %5, %28 : vector<128x32xf32>
    %c0_23 = arith.constant 0 : index
    %c0_24 = arith.constant 0 : index
    %30 = vector.load %arg11[%c0_23, %c0_24] : memref<32x16xbf16, #tpu.memory_space<vmem>>, vector<32x16xbf16>
    %31 = arith.truncf %29 : vector<128x32xf32> to vector<128x32xbf16>
    %cst_25 = arith.constant dense<0.000000e+00> : vector<128x16xf32>
    %32 = tpu.matmul %31, %30, %cst_25 {dimension_numbers = #tpu.dot_dimension_numbers<[1], [0], [0], [1], [0, 0, 1, 1], [], []>} : vector<128x32xbf16>, vector<32x16xbf16>, vector<128x16xf32> -> vector<128x16xf32>
    %c0_26 = arith.constant 0 : index
    %c0_27 = arith.constant 0 : index
    %33 = vector.load %arg12[%c0_26, %c0_27] : memref<1x16xf32, #tpu.memory_space<vmem>>, vector<1x16xf32>
    %34 = vector.broadcast %33 : vector<1x16xf32> to vector<128x16xf32>
    %35 = arith.addf %32, %34 : vector<128x16xf32>
    %36 = arith.mulf %7, %26 : vector<2x32xf32>
    %c0_28 = arith.constant 0 : index
    %c0_29 = arith.constant 0 : index
    %37 = vector.load %arg11[%c0_28, %c0_29] : memref<32x16xbf16, #tpu.memory_space<vmem>>, vector<32x16xbf16>
    %38 = arith.truncf %36 : vector<2x32xf32> to vector<2x32xbf16>
    %cst_30 = arith.constant dense<0.000000e+00> : vector<2x16xf32>
    %39 = tpu.matmul %38, %37, %cst_30 {dimension_numbers = #tpu.dot_dimension_numbers<[1], [0], [0], [1], [0, 0, 1, 1], [], []>} : vector<2x32xbf16>, vector<32x16xbf16>, vector<2x16xf32> -> vector<2x16xf32>
    %c0_31 = arith.constant 0 : index
    %c0_32 = arith.constant 0 : index
    %40 = vector.load %arg12[%c0_31, %c0_32] : memref<1x16xf32, #tpu.memory_space<vmem>>, vector<1x16xf32>
    %41 = vector.broadcast %40 : vector<1x16xf32> to vector<2x16xf32>
    %42 = arith.addf %39, %41 : vector<2x16xf32>
    %c0_33 = arith.constant 0 : index
    %c0_34 = arith.constant 0 : index
    %43 = vector.load %arg13[%c0_33, %c0_34] : memref<16x4xbf16, #tpu.memory_space<vmem>>, vector<16x4xbf16>
    %44 = arith.truncf %42 : vector<2x16xf32> to vector<2x16xbf16>
    %cst_35 = arith.constant dense<0.000000e+00> : vector<2x4xf32>
    %45 = tpu.matmul %44, %43, %cst_35 {dimension_numbers = #tpu.dot_dimension_numbers<[1], [0], [0], [1], [0, 0, 1, 1], [], []>} : vector<2x16xbf16>, vector<16x4xbf16>, vector<2x4xf32> -> vector<2x4xf32>
    %c0_36 = arith.constant 0 : index
    %c0_37 = arith.constant 0 : index
    %46 = vector.load %arg14[%c0_36, %c0_37] : memref<1x4xf32, #tpu.memory_space<vmem>>, vector<1x4xf32>
    %47 = vector.broadcast %46 : vector<1x4xf32> to vector<2x4xf32>
    %48 = arith.addf %45, %47 : vector<2x4xf32>
    %cst_38 = arith.constant 0.000000e+00 : f32
    %49 = vector.broadcast %cst_38 : f32 to vector<2x4xf32>
    %50 = arith.maximumf %48, %49 : vector<2x4xf32>
    %c0_39 = arith.constant 0 : index
    %c0_40 = arith.constant 0 : index
    %51 = vector.load %arg15[%c0_39, %c0_40] : memref<4x16xbf16, #tpu.memory_space<vmem>>, vector<4x16xbf16>
    %52 = arith.truncf %50 : vector<2x4xf32> to vector<2x4xbf16>
    %cst_41 = arith.constant dense<0.000000e+00> : vector<2x16xf32>
    %53 = tpu.matmul %52, %51, %cst_41 {dimension_numbers = #tpu.dot_dimension_numbers<[1], [0], [0], [1], [0, 0, 1, 1], [], []>} : vector<2x4xbf16>, vector<4x16xbf16>, vector<2x16xf32> -> vector<2x16xf32>
    %c0_42 = arith.constant 0 : index
    %c0_43 = arith.constant 0 : index
    %54 = vector.load %arg16[%c0_42, %c0_43] : memref<1x16xf32, #tpu.memory_space<vmem>>, vector<1x16xf32>
    %55 = vector.broadcast %54 : vector<1x16xf32> to vector<2x16xf32>
    %56 = arith.addf %53, %55 : vector<2x16xf32>
    %57 = arith.negf %56 : vector<2x16xf32>
    %58 = math.exp %57 : vector<2x16xf32>
    %cst_44 = arith.constant 1.000000e+00 : f32
    %59 = vector.broadcast %cst_44 : f32 to vector<2x16xf32>
    %60 = arith.addf %59, %58 : vector<2x16xf32>
    %61 = arith.divf %59, %60 : vector<2x16xf32>
    %62 = arith.truncf %61 : vector<2x16xf32> to vector<2x16xbf16>
    %cst_45 = arith.constant dense<0.000000e+00> : vector<128x16xf32>
    %63 = tpu.matmul %1, %62, %cst_45 {dimension_numbers = #tpu.dot_dimension_numbers<[1], [0], [0], [1], [0, 0, 1, 1], [], []>} : vector<128x2xbf16>, vector<2x16xbf16>, vector<128x16xf32> -> vector<128x16xf32>
    %64 = arith.mulf %35, %63 : vector<128x16xf32>
    %65 = arith.truncf %64 : vector<128x16xf32> to vector<128x16xbf16>
    %cst_46 = arith.constant 0.000000e+00 : f32
    %66 = vector.broadcast %cst_46 : f32 to vector<32x64xf32>
    %c0_47 = arith.constant 0 : index
    %c0_48 = arith.constant 0 : index
    %c0_49 = arith.constant 0 : index
    %67 = vector.load %arg2[%c0_47, %c0_48, %c0_49] : memref<9x32x128xbf16, #tpu.memory_space<vmem>>, vector<1x32x128xbf16>
    %68 = vector.shape_cast %67 : vector<1x32x128xbf16> to vector<32x128xbf16>
    %cst_50 = arith.constant dense<0.000000e+00> : vector<32x16xf32>
    %69 = tpu.matmul %68, %65, %cst_50 {dimension_numbers = #tpu.dot_dimension_numbers<[1], [0], [0], [1], [0, 0, 1, 1], [], []>} : vector<32x128xbf16>, vector<128x16xbf16>, vector<32x16xf32> -> vector<32x16xf32>
    %c0_51 = arith.constant 0 : index
    %c0_52 = arith.constant 0 : index
    %c0_53 = arith.constant 0 : index
    %70 = vector.load %arg17[%c0_51, %c0_52, %c0_53] : memref<9x16x64xbf16, #tpu.memory_space<vmem>>, vector<1x16x64xbf16>
    %71 = vector.shape_cast %70 : vector<1x16x64xbf16> to vector<16x64xbf16>
    %72 = arith.truncf %69 : vector<32x16xf32> to vector<32x16xbf16>
    %cst_54 = arith.constant dense<0.000000e+00> : vector<32x64xf32>
    %73 = tpu.matmul %72, %71, %cst_54 {dimension_numbers = #tpu.dot_dimension_numbers<[1], [0], [0], [1], [0, 0, 1, 1], [], []>} : vector<32x16xbf16>, vector<16x64xbf16>, vector<32x64xf32> -> vector<32x64xf32>
    %74 = arith.addf %66, %73 : vector<32x64xf32>
    %c1 = arith.constant 1 : index
    %c0_55 = arith.constant 0 : index
    %c0_56 = arith.constant 0 : index
    %75 = vector.load %arg2[%c1, %c0_55, %c0_56] : memref<9x32x128xbf16, #tpu.memory_space<vmem>>, vector<1x32x128xbf16>
    %76 = vector.shape_cast %75 : vector<1x32x128xbf16> to vector<32x128xbf16>
    %cst_57 = arith.constant dense<0.000000e+00> : vector<32x16xf32>
    %77 = tpu.matmul %76, %65, %cst_57 {dimension_numbers = #tpu.dot_dimension_numbers<[1], [0], [0], [1], [0, 0, 1, 1], [], []>} : vector<32x128xbf16>, vector<128x16xbf16>, vector<32x16xf32> -> vector<32x16xf32>
    %c1_58 = arith.constant 1 : index
    %c0_59 = arith.constant 0 : index
    %c0_60 = arith.constant 0 : index
    %78 = vector.load %arg17[%c1_58, %c0_59, %c0_60] : memref<9x16x64xbf16, #tpu.memory_space<vmem>>, vector<1x16x64xbf16>
    %79 = vector.shape_cast %78 : vector<1x16x64xbf16> to vector<16x64xbf16>
    %80 = arith.truncf %77 : vector<32x16xf32> to vector<32x16xbf16>
    %cst_61 = arith.constant dense<0.000000e+00> : vector<32x64xf32>
    %81 = tpu.matmul %80, %79, %cst_61 {dimension_numbers = #tpu.dot_dimension_numbers<[1], [0], [0], [1], [0, 0, 1, 1], [], []>} : vector<32x16xbf16>, vector<16x64xbf16>, vector<32x64xf32> -> vector<32x64xf32>
    %82 = arith.addf %74, %81 : vector<32x64xf32>
    %c2 = arith.constant 2 : index
    %c0_62 = arith.constant 0 : index
    %c0_63 = arith.constant 0 : index
    %83 = vector.load %arg2[%c2, %c0_62, %c0_63] : memref<9x32x128xbf16, #tpu.memory_space<vmem>>, vector<1x32x128xbf16>
    %84 = vector.shape_cast %83 : vector<1x32x128xbf16> to vector<32x128xbf16>
    %cst_64 = arith.constant dense<0.000000e+00> : vector<32x16xf32>
    %85 = tpu.matmul %84, %65, %cst_64 {dimension_numbers = #tpu.dot_dimension_numbers<[1], [0], [0], [1], [0, 0, 1, 1], [], []>} : vector<32x128xbf16>, vector<128x16xbf16>, vector<32x16xf32> -> vector<32x16xf32>
    %c2_65 = arith.constant 2 : index
    %c0_66 = arith.constant 0 : index
    %c0_67 = arith.constant 0 : index
    %86 = vector.load %arg17[%c2_65, %c0_66, %c0_67] : memref<9x16x64xbf16, #tpu.memory_space<vmem>>, vector<1x16x64xbf16>
    %87 = vector.shape_cast %86 : vector<1x16x64xbf16> to vector<16x64xbf16>
    %88 = arith.truncf %85 : vector<32x16xf32> to vector<32x16xbf16>
    %cst_68 = arith.constant dense<0.000000e+00> : vector<32x64xf32>
    %89 = tpu.matmul %88, %87, %cst_68 {dimension_numbers = #tpu.dot_dimension_numbers<[1], [0], [0], [1], [0, 0, 1, 1], [], []>} : vector<32x16xbf16>, vector<16x64xbf16>, vector<32x64xf32> -> vector<32x64xf32>
    %90 = arith.addf %82, %89 : vector<32x64xf32>
    %c3 = arith.constant 3 : index
    %c0_69 = arith.constant 0 : index
    %c0_70 = arith.constant 0 : index
    %91 = vector.load %arg2[%c3, %c0_69, %c0_70] : memref<9x32x128xbf16, #tpu.memory_space<vmem>>, vector<1x32x128xbf16>
    %92 = vector.shape_cast %91 : vector<1x32x128xbf16> to vector<32x128xbf16>
    %cst_71 = arith.constant dense<0.000000e+00> : vector<32x16xf32>
    %93 = tpu.matmul %92, %65, %cst_71 {dimension_numbers = #tpu.dot_dimension_numbers<[1], [0], [0], [1], [0, 0, 1, 1], [], []>} : vector<32x128xbf16>, vector<128x16xbf16>, vector<32x16xf32> -> vector<32x16xf32>
    %c3_72 = arith.constant 3 : index
    %c0_73 = arith.constant 0 : index
    %c0_74 = arith.constant 0 : index
    %94 = vector.load %arg17[%c3_72, %c0_73, %c0_74] : memref<9x16x64xbf16, #tpu.memory_space<vmem>>, vector<1x16x64xbf16>
    %95 = vector.shape_cast %94 : vector<1x16x64xbf16> to vector<16x64xbf16>
    %96 = arith.truncf %93 : vector<32x16xf32> to vector<32x16xbf16>
    %cst_75 = arith.constant dense<0.000000e+00> : vector<32x64xf32>
    %97 = tpu.matmul %96, %95, %cst_75 {dimension_numbers = #tpu.dot_dimension_numbers<[1], [0], [0], [1], [0, 0, 1, 1], [], []>} : vector<32x16xbf16>, vector<16x64xbf16>, vector<32x64xf32> -> vector<32x64xf32>
    %98 = arith.addf %90, %97 : vector<32x64xf32>
    %c4 = arith.constant 4 : index
    %c0_76 = arith.constant 0 : index
    %c0_77 = arith.constant 0 : index
    %99 = vector.load %arg2[%c4, %c0_76, %c0_77] : memref<9x32x128xbf16, #tpu.memory_space<vmem>>, vector<1x32x128xbf16>
    %100 = vector.shape_cast %99 : vector<1x32x128xbf16> to vector<32x128xbf16>
    %cst_78 = arith.constant dense<0.000000e+00> : vector<32x16xf32>
    %101 = tpu.matmul %100, %65, %cst_78 {dimension_numbers = #tpu.dot_dimension_numbers<[1], [0], [0], [1], [0, 0, 1, 1], [], []>} : vector<32x128xbf16>, vector<128x16xbf16>, vector<32x16xf32> -> vector<32x16xf32>
    %c4_79 = arith.constant 4 : index
    %c0_80 = arith.constant 0 : index
    %c0_81 = arith.constant 0 : index
    %102 = vector.load %arg17[%c4_79, %c0_80, %c0_81] : memref<9x16x64xbf16, #tpu.memory_space<vmem>>, vector<1x16x64xbf16>
    %103 = vector.shape_cast %102 : vector<1x16x64xbf16> to vector<16x64xbf16>
    %104 = arith.truncf %101 : vector<32x16xf32> to vector<32x16xbf16>
    %cst_82 = arith.constant dense<0.000000e+00> : vector<32x64xf32>
    %105 = tpu.matmul %104, %103, %cst_82 {dimension_numbers = #tpu.dot_dimension_numbers<[1], [0], [0], [1], [0, 0, 1, 1], [], []>} : vector<32x16xbf16>, vector<16x64xbf16>, vector<32x64xf32> -> vector<32x64xf32>
    %106 = arith.addf %98, %105 : vector<32x64xf32>
    %c5 = arith.constant 5 : index
    %c0_83 = arith.constant 0 : index
    %c0_84 = arith.constant 0 : index
    %107 = vector.load %arg2[%c5, %c0_83, %c0_84] : memref<9x32x128xbf16, #tpu.memory_space<vmem>>, vector<1x32x128xbf16>
    %108 = vector.shape_cast %107 : vector<1x32x128xbf16> to vector<32x128xbf16>
    %cst_85 = arith.constant dense<0.000000e+00> : vector<32x16xf32>
    %109 = tpu.matmul %108, %65, %cst_85 {dimension_numbers = #tpu.dot_dimension_numbers<[1], [0], [0], [1], [0, 0, 1, 1], [], []>} : vector<32x128xbf16>, vector<128x16xbf16>, vector<32x16xf32> -> vector<32x16xf32>
    %c5_86 = arith.constant 5 : index
    %c0_87 = arith.constant 0 : index
    %c0_88 = arith.constant 0 : index
    %110 = vector.load %arg17[%c5_86, %c0_87, %c0_88] : memref<9x16x64xbf16, #tpu.memory_space<vmem>>, vector<1x16x64xbf16>
    %111 = vector.shape_cast %110 : vector<1x16x64xbf16> to vector<16x64xbf16>
    %112 = arith.truncf %109 : vector<32x16xf32> to vector<32x16xbf16>
    %cst_89 = arith.constant dense<0.000000e+00> : vector<32x64xf32>
    %113 = tpu.matmul %112, %111, %cst_89 {dimension_numbers = #tpu.dot_dimension_numbers<[1], [0], [0], [1], [0, 0, 1, 1], [], []>} : vector<32x16xbf16>, vector<16x64xbf16>, vector<32x64xf32> -> vector<32x64xf32>
    %114 = arith.addf %106, %113 : vector<32x64xf32>
    %c6 = arith.constant 6 : index
    %c0_90 = arith.constant 0 : index
    %c0_91 = arith.constant 0 : index
    %115 = vector.load %arg2[%c6, %c0_90, %c0_91] : memref<9x32x128xbf16, #tpu.memory_space<vmem>>, vector<1x32x128xbf16>
    %116 = vector.shape_cast %115 : vector<1x32x128xbf16> to vector<32x128xbf16>
    %cst_92 = arith.constant dense<0.000000e+00> : vector<32x16xf32>
    %117 = tpu.matmul %116, %65, %cst_92 {dimension_numbers = #tpu.dot_dimension_numbers<[1], [0], [0], [1], [0, 0, 1, 1], [], []>} : vector<32x128xbf16>, vector<128x16xbf16>, vector<32x16xf32> -> vector<32x16xf32>
    %c6_93 = arith.constant 6 : index
    %c0_94 = arith.constant 0 : index
    %c0_95 = arith.constant 0 : index
    %118 = vector.load %arg17[%c6_93, %c0_94, %c0_95] : memref<9x16x64xbf16, #tpu.memory_space<vmem>>, vector<1x16x64xbf16>
    %119 = vector.shape_cast %118 : vector<1x16x64xbf16> to vector<16x64xbf16>
    %120 = arith.truncf %117 : vector<32x16xf32> to vector<32x16xbf16>
    %cst_96 = arith.constant dense<0.000000e+00> : vector<32x64xf32>
    %121 = tpu.matmul %120, %119, %cst_96 {dimension_numbers = #tpu.dot_dimension_numbers<[1], [0], [0], [1], [0, 0, 1, 1], [], []>} : vector<32x16xbf16>, vector<16x64xbf16>, vector<32x64xf32> -> vector<32x64xf32>
    %122 = arith.addf %114, %121 : vector<32x64xf32>
    %c7 = arith.constant 7 : index
    %c0_97 = arith.constant 0 : index
    %c0_98 = arith.constant 0 : index
    %123 = vector.load %arg2[%c7, %c0_97, %c0_98] : memref<9x32x128xbf16, #tpu.memory_space<vmem>>, vector<1x32x128xbf16>
    %124 = vector.shape_cast %123 : vector<1x32x128xbf16> to vector<32x128xbf16>
    %cst_99 = arith.constant dense<0.000000e+00> : vector<32x16xf32>
    %125 = tpu.matmul %124, %65, %cst_99 {dimension_numbers = #tpu.dot_dimension_numbers<[1], [0], [0], [1], [0, 0, 1, 1], [], []>} : vector<32x128xbf16>, vector<128x16xbf16>, vector<32x16xf32> -> vector<32x16xf32>
    %c7_100 = arith.constant 7 : index
    %c0_101 = arith.constant 0 : index
    %c0_102 = arith.constant 0 : index
    %126 = vector.load %arg17[%c7_100, %c0_101, %c0_102] : memref<9x16x64xbf16, #tpu.memory_space<vmem>>, vector<1x16x64xbf16>
    %127 = vector.shape_cast %126 : vector<1x16x64xbf16> to vector<16x64xbf16>
    %128 = arith.truncf %125 : vector<32x16xf32> to vector<32x16xbf16>
    %cst_103 = arith.constant dense<0.000000e+00> : vector<32x64xf32>
    %129 = tpu.matmul %128, %127, %cst_103 {dimension_numbers = #tpu.dot_dimension_numbers<[1], [0], [0], [1], [0, 0, 1, 1], [], []>} : vector<32x16xbf16>, vector<16x64xbf16>, vector<32x64xf32> -> vector<32x64xf32>
    %130 = arith.addf %122, %129 : vector<32x64xf32>
    %c8 = arith.constant 8 : index
    %c0_104 = arith.constant 0 : index
    %c0_105 = arith.constant 0 : index
    %131 = vector.load %arg2[%c8, %c0_104, %c0_105] : memref<9x32x128xbf16, #tpu.memory_space<vmem>>, vector<1x32x128xbf16>
    %132 = vector.shape_cast %131 : vector<1x32x128xbf16> to vector<32x128xbf16>
    %cst_106 = arith.constant dense<0.000000e+00> : vector<32x16xf32>
    %133 = tpu.matmul %132, %65, %cst_106 {dimension_numbers = #tpu.dot_dimension_numbers<[1], [0], [0], [1], [0, 0, 1, 1], [], []>} : vector<32x128xbf16>, vector<128x16xbf16>, vector<32x16xf32> -> vector<32x16xf32>
    %c8_107 = arith.constant 8 : index
    %c0_108 = arith.constant 0 : index
    %c0_109 = arith.constant 0 : index
    %134 = vector.load %arg17[%c8_107, %c0_108, %c0_109] : memref<9x16x64xbf16, #tpu.memory_space<vmem>>, vector<1x16x64xbf16>
    %135 = vector.shape_cast %134 : vector<1x16x64xbf16> to vector<16x64xbf16>
    %136 = arith.truncf %133 : vector<32x16xf32> to vector<32x16xbf16>
    %cst_110 = arith.constant dense<0.000000e+00> : vector<32x64xf32>
    %137 = tpu.matmul %136, %135, %cst_110 {dimension_numbers = #tpu.dot_dimension_numbers<[1], [0], [0], [1], [0, 0, 1, 1], [], []>} : vector<32x16xbf16>, vector<16x64xbf16>, vector<32x64xf32> -> vector<32x64xf32>
    %138 = arith.addf %130, %137 : vector<32x64xf32>
    %c0_111 = arith.constant 0 : index
    %c0_112 = arith.constant 0 : index
    %139 = vector.load %arg18[%c0_111, %c0_112] : memref<1x64xf32, #tpu.memory_space<vmem>>, vector<1x64xf32>
    %140 = vector.broadcast %139 : vector<1x64xf32> to vector<32x64xf32>
    %141 = arith.addf %138, %140 : vector<32x64xf32>
    %142 = arith.truncf %141 : vector<32x64xf32> to vector<32x64xbf16>
    %cst_113 = arith.constant dense<0.000000e+00> : vector<2x64xf32>
    %143 = tpu.matmul %2, %142, %cst_113 {dimension_numbers = #tpu.dot_dimension_numbers<[1], [0], [0], [1], [0, 0, 1, 1], [], []>} : vector<2x32xbf16>, vector<32x64xbf16>, vector<2x64xf32> -> vector<2x64xf32>
    %c0_114 = arith.constant 0 : index
    %c0_115 = arith.constant 0 : index
    %144 = vector.load %arg19[%c0_114, %c0_115] : memref<64x16xbf16, #tpu.memory_space<vmem>>, vector<64x16xbf16>
    %145 = arith.truncf %143 : vector<2x64xf32> to vector<2x64xbf16>
    %cst_116 = arith.constant dense<0.000000e+00> : vector<2x16xf32>
    %146 = tpu.matmul %145, %144, %cst_116 {dimension_numbers = #tpu.dot_dimension_numbers<[1], [0], [0], [1], [0, 0, 1, 1], [], []>} : vector<2x64xbf16>, vector<64x16xbf16>, vector<2x16xf32> -> vector<2x16xf32>
    %c0_117 = arith.constant 0 : index
    %c0_118 = arith.constant 0 : index
    %147 = vector.load %arg20[%c0_117, %c0_118] : memref<1x16xf32, #tpu.memory_space<vmem>>, vector<1x16xf32>
    %148 = vector.broadcast %147 : vector<1x16xf32> to vector<2x16xf32>
    %149 = arith.addf %146, %148 : vector<2x16xf32>
    %cst_119 = arith.constant 0.000000e+00 : f32
    %150 = vector.broadcast %cst_119 : f32 to vector<2x16xf32>
    %151 = arith.maximumf %149, %150 : vector<2x16xf32>
    %c0_120 = arith.constant 0 : index
    %c0_121 = arith.constant 0 : index
    %152 = vector.load %arg21[%c0_120, %c0_121] : memref<16x64xbf16, #tpu.memory_space<vmem>>, vector<16x64xbf16>
    %153 = arith.truncf %151 : vector<2x16xf32> to vector<2x16xbf16>
    %cst_122 = arith.constant dense<0.000000e+00> : vector<2x64xf32>
    %154 = tpu.matmul %153, %152, %cst_122 {dimension_numbers = #tpu.dot_dimension_numbers<[1], [0], [0], [1], [0, 0, 1, 1], [], []>} : vector<2x16xbf16>, vector<16x64xbf16>, vector<2x64xf32> -> vector<2x64xf32>
    %c0_123 = arith.constant 0 : index
    %c0_124 = arith.constant 0 : index
    %155 = vector.load %arg22[%c0_123, %c0_124] : memref<1x64xf32, #tpu.memory_space<vmem>>, vector<1x64xf32>
    %156 = vector.broadcast %155 : vector<1x64xf32> to vector<2x64xf32>
    %157 = arith.addf %154, %156 : vector<2x64xf32>
    %158 = arith.negf %157 : vector<2x64xf32>
    %159 = math.exp %158 : vector<2x64xf32>
    %cst_125 = arith.constant 1.000000e+00 : f32
    %160 = vector.broadcast %cst_125 : f32 to vector<2x64xf32>
    %161 = arith.addf %160, %159 : vector<2x64xf32>
    %162 = arith.divf %160, %161 : vector<2x64xf32>
    %163 = arith.truncf %162 : vector<2x64xf32> to vector<2x64xbf16>
    %cst_126 = arith.constant dense<0.000000e+00> : vector<32x64xf32>
    %164 = tpu.matmul %3, %163, %cst_126 {dimension_numbers = #tpu.dot_dimension_numbers<[1], [0], [0], [1], [0, 0, 1, 1], [], []>} : vector<32x2xbf16>, vector<2x64xbf16>, vector<32x64xf32> -> vector<32x64xf32>
    %165 = arith.mulf %141, %164 : vector<32x64xf32>
    %c0_127 = arith.constant 0 : index
    %c0_128 = arith.constant 0 : index
    %166 = vector.load %arg23[%c0_127, %c0_128] : memref<64x32xbf16, #tpu.memory_space<vmem>>, vector<64x32xbf16>
    %167 = arith.truncf %165 : vector<32x64xf32> to vector<32x64xbf16>
    %cst_129 = arith.constant dense<0.000000e+00> : vector<32x32xf32>
    %168 = tpu.matmul %167, %166, %cst_129 {dimension_numbers = #tpu.dot_dimension_numbers<[1], [0], [0], [1], [0, 0, 1, 1], [], []>} : vector<32x64xbf16>, vector<64x32xbf16>, vector<32x32xf32> -> vector<32x32xf32>
    %c0_130 = arith.constant 0 : index
    %c0_131 = arith.constant 0 : index
    %169 = vector.load %arg24[%c0_130, %c0_131] : memref<1x32xf32, #tpu.memory_space<vmem>>, vector<1x32xf32>
    %170 = vector.broadcast %169 : vector<1x32xf32> to vector<32x32xf32>
    %171 = arith.addf %168, %170 : vector<32x32xf32>
    %172 = arith.truncf %171 : vector<32x32xf32> to vector<32x32xbf16>
    %cst_132 = arith.constant dense<0.000000e+00> : vector<2x32xf32>
    %173 = tpu.matmul %2, %172, %cst_132 {dimension_numbers = #tpu.dot_dimension_numbers<[1], [0], [0], [1], [0, 0, 1, 1], [], []>} : vector<2x32xbf16>, vector<32x32xbf16>, vector<2x32xf32> -> vector<2x32xf32>
    %c0_133 = arith.constant 0 : index
    %c0_134 = arith.constant 0 : index
    %174 = vector.load %arg25[%c0_133, %c0_134] : memref<32x8xbf16, #tpu.memory_space<vmem>>, vector<32x8xbf16>
    %175 = arith.truncf %173 : vector<2x32xf32> to vector<2x32xbf16>
    %cst_135 = arith.constant dense<0.000000e+00> : vector<2x8xf32>
    %176 = tpu.matmul %175, %174, %cst_135 {dimension_numbers = #tpu.dot_dimension_numbers<[1], [0], [0], [1], [0, 0, 1, 1], [], []>} : vector<2x32xbf16>, vector<32x8xbf16>, vector<2x8xf32> -> vector<2x8xf32>
    %c0_136 = arith.constant 0 : index
    %c0_137 = arith.constant 0 : index
    %177 = vector.load %arg26[%c0_136, %c0_137] : memref<1x8xf32, #tpu.memory_space<vmem>>, vector<1x8xf32>
    %178 = vector.broadcast %177 : vector<1x8xf32> to vector<2x8xf32>
    %179 = arith.addf %176, %178 : vector<2x8xf32>
    %cst_138 = arith.constant 0.000000e+00 : f32
    %180 = vector.broadcast %cst_138 : f32 to vector<2x8xf32>
    %181 = arith.maximumf %179, %180 : vector<2x8xf32>
    %c0_139 = arith.constant 0 : index
    %c0_140 = arith.constant 0 : index
    %182 = vector.load %arg27[%c0_139, %c0_140] : memref<8x32xbf16, #tpu.memory_space<vmem>>, vector<8x32xbf16>
    %183 = arith.truncf %181 : vector<2x8xf32> to vector<2x8xbf16>
    %cst_141 = arith.constant dense<0.000000e+00> : vector<2x32xf32>
    %184 = tpu.matmul %183, %182, %cst_141 {dimension_numbers = #tpu.dot_dimension_numbers<[1], [0], [0], [1], [0, 0, 1, 1], [], []>} : vector<2x8xbf16>, vector<8x32xbf16>, vector<2x32xf32> -> vector<2x32xf32>
    %c0_142 = arith.constant 0 : index
    %c0_143 = arith.constant 0 : index
    %185 = vector.load %arg28[%c0_142, %c0_143] : memref<1x32xf32, #tpu.memory_space<vmem>>, vector<1x32xf32>
    %186 = vector.broadcast %185 : vector<1x32xf32> to vector<2x32xf32>
    %187 = arith.addf %184, %186 : vector<2x32xf32>
    %188 = arith.negf %187 : vector<2x32xf32>
    %189 = math.exp %188 : vector<2x32xf32>
    %cst_144 = arith.constant 1.000000e+00 : f32
    %190 = vector.broadcast %cst_144 : f32 to vector<2x32xf32>
    %191 = arith.addf %190, %189 : vector<2x32xf32>
    %192 = arith.divf %190, %191 : vector<2x32xf32>
    %193 = arith.mulf %173, %192 : vector<2x32xf32>
    %cst_145 = arith.constant 0.000000e+00 : f32
    %194 = vector.broadcast %cst_145 : f32 to vector<1x1xf32>
    %195 = vector.extract_strided_slice %193 {offsets = [0, 0], sizes = [1, 32], strides = [1, 1]} : vector<2x32xf32> to vector<1x32xf32>
    %c0_146 = arith.constant 0 : index
    %c0_147 = arith.constant 0 : index
    %c0_148 = arith.constant 0 : index
    %196 = vector.load %arg29[%c0_146, %c0_147, %c0_148] : memref<2x32x1xbf16, #tpu.memory_space<vmem>>, vector<1x32x1xbf16>
    %197 = vector.shape_cast %196 : vector<1x32x1xbf16> to vector<32x1xbf16>
    %198 = arith.truncf %195 : vector<1x32xf32> to vector<1x32xbf16>
    %cst_149 = arith.constant dense<0.000000e+00> : vector<1x1xf32>
    %199 = tpu.matmul %198, %197, %cst_149 {dimension_numbers = #tpu.dot_dimension_numbers<[1], [0], [0], [1], [0, 0, 1, 1], [], []>} : vector<1x32xbf16>, vector<32x1xbf16>, vector<1x1xf32> -> vector<1x1xf32>
    %200 = arith.addf %194, %199 : vector<1x1xf32>
    %201 = vector.extract_strided_slice %193 {offsets = [1, 0], sizes = [1, 32], strides = [1, 1]} : vector<2x32xf32> to vector<1x32xf32>
    %c1_150 = arith.constant 1 : index
    %c0_151 = arith.constant 0 : index
    %c0_152 = arith.constant 0 : index
    %202 = vector.load %arg29[%c1_150, %c0_151, %c0_152] : memref<2x32x1xbf16, #tpu.memory_space<vmem>>, vector<1x32x1xbf16>
    %203 = vector.shape_cast %202 : vector<1x32x1xbf16> to vector<32x1xbf16>
    %204 = arith.truncf %201 : vector<1x32xf32> to vector<1x32xbf16>
    %cst_153 = arith.constant dense<0.000000e+00> : vector<1x1xf32>
    %205 = tpu.matmul %204, %203, %cst_153 {dimension_numbers = #tpu.dot_dimension_numbers<[1], [0], [0], [1], [0, 0, 1, 1], [], []>} : vector<1x32xbf16>, vector<32x1xbf16>, vector<1x1xf32> -> vector<1x1xf32>
    %206 = arith.addf %200, %205 : vector<1x1xf32>
    %c0_154 = arith.constant 0 : index
    %c0_155 = arith.constant 0 : index
    %207 = vector.load %arg30[%c0_154, %c0_155] : memref<1x1xf32, #tpu.memory_space<vmem>>, vector<1x1xf32>
    %208 = arith.addf %206, %207 : vector<1x1xf32>
    %c0_156 = arith.constant 0 : index
    %c0_157 = arith.constant 0 : index
    %c0_158 = arith.constant 0 : index
    %209 = vector.load %arg31[%c0_156, %c0_157, %c0_158] : memref<1x1x1xf32, #tpu.memory_space<vmem>>, vector<1x1x1xf32>
    %210 = vector.shape_cast %209 : vector<1x1x1xf32> to vector<1x1xf32>
    %211 = vector.shape_cast %208 : vector<1x1xf32> to vector<1x1x1xf32>
    tpu.vector_store %arg31[%c0_156, %c0_157, %c0_158], %211 {strides = array<i32>} : memref<1x1x1xf32, #tpu.memory_space<vmem>>, vector<1x1x1xf32>,
    return
  }
  func.func @transform_0(%arg0: i32) -> (i32, i32, i32) {
    %c0_i32 = arith.constant 0 : i32
    %c0_i32_0 = arith.constant 0 : i32
    %c0_i32_1 = arith.constant 0 : i32
    return %arg0, %c0_i32, %c0_i32_0 : i32, i32, i32
  }
  func.func @transform_1(%arg0: i32) -> (i32, i32, i32) {
    %c0_i32 = arith.constant 0 : i32
    %c0_i32_0 = arith.constant 0 : i32
    %c0_i32_1 = arith.constant 0 : i32
    %c0_i32_2 = arith.constant 0 : i32
    return %c0_i32, %c0_i32_0, %c0_i32_1 : i32, i32, i32
  }
  func.func @transform_2(%arg0: i32) -> (i32, i32) {
    %c0_i32 = arith.constant 0 : i32
    %c0_i32_0 = arith.constant 0 : i32
    %c0_i32_1 = arith.constant 0 : i32
    return %c0_i32, %c0_i32_0 : i32, i32
  }
  func.func @transform_3(%arg0: i32) -> (i32, i32) {
    %c0_i32 = arith.constant 0 : i32
    %c0_i32_0 = arith.constant 0 : i32
    %c0_i32_1 = arith.constant 0 : i32
    return %c0_i32, %c0_i32_0 : i32, i32
  }
  func.func @transform_4(%arg0: i32) -> (i32, i32) {
    %c0_i32 = arith.constant 0 : i32
    %c0_i32_0 = arith.constant 0 : i32
    %c0_i32_1 = arith.constant 0 : i32
    return %c0_i32, %c0_i32_0 : i32, i32
  }
  func.func @transform_5(%arg0: i32) -> (i32, i32) {
    %c0_i32 = arith.constant 0 : i32
    %c0_i32_0 = arith.constant 0 : i32
    %c0_i32_1 = arith.constant 0 : i32
    return %c0_i32, %c0_i32_0 : i32, i32
  }
  func.func @transform_6(%arg0: i32) -> (i32, i32) {
    %c0_i32 = arith.constant 0 : i32
    %c0_i32_0 = arith.constant 0 : i32
    %c0_i32_1 = arith.constant 0 : i32
    return %c0_i32, %c0_i32_0 : i32, i32
  }
  func.func @transform_7(%arg0: i32) -> (i32, i32) {
    %c0_i32 = arith.constant 0 : i32
    %c0_i32_0 = arith.constant 0 : i32
    %c0_i32_1 = arith.constant 0 : i32
    return %c0_i32, %c0_i32_0 : i32, i32
  }
  func.func @transform_8(%arg0: i32) -> (i32, i32) {
    %c0_i32 = arith.constant 0 : i32
    %c0_i32_0 = arith.constant 0 : i32
    %c0_i32_1 = arith.constant 0 : i32
    return %c0_i32, %c0_i32_0 : i32, i32
  }
  func.func @transform_9(%arg0: i32) -> (i32, i32) {
    %c0_i32 = arith.constant 0 : i32
    %c0_i32_0 = arith.constant 0 : i32
    %c0_i32_1 = arith.constant 0 : i32
    return %c0_i32, %c0_i32_0 : i32, i32
  }
  func.func @transform_10(%arg0: i32) -> (i32, i32) {
    %c0_i32 = arith.constant 0 : i32
    %c0_i32_0 = arith.constant 0 : i32
    %c0_i32_1 = arith.constant 0 : i32
    return %c0_i32, %c0_i32_0 : i32, i32
  }
  func.func @transform_11(%arg0: i32) -> (i32, i32) {
    %c0_i32 = arith.constant 0 : i32
    %c0_i32_0 = arith.constant 0 : i32
    %c0_i32_1 = arith.constant 0 : i32
    return %c0_i32, %c0_i32_0 : i32, i32
  }
  func.func @transform_12(%arg0: i32) -> (i32, i32) {
    %c0_i32 = arith.constant 0 : i32
    %c0_i32_0 = arith.constant 0 : i32
    %c0_i32_1 = arith.constant 0 : i32
    return %c0_i32, %c0_i32_0 : i32, i32
  }
  func.func @transform_13(%arg0: i32) -> (i32, i32) {
    %c0_i32 = arith.constant 0 : i32
    %c0_i32_0 = arith.constant 0 : i32
    %c0_i32_1 = arith.constant 0 : i32
    return %c0_i32, %c0_i32_0 : i32, i32
  }
  func.func @transform_14(%arg0: i32) -> (i32, i32) {
    %c0_i32 = arith.constant 0 : i32
    %c0_i32_0 = arith.constant 0 : i32
    %c0_i32_1 = arith.constant 0 : i32
    return %c0_i32, %c0_i32_0 : i32, i32
  }
  func.func @transform_15(%arg0: i32) -> (i32, i32) {
    %c0_i32 = arith.constant 0 : i32
    %c0_i32_0 = arith.constant 0 : i32
    %c0_i32_1 = arith.constant 0 : i32
    return %c0_i32, %c0_i32_0 : i32, i32
  }
  func.func @transform_16(%arg0: i32) -> (i32, i32, i32) {
    %c0_i32 = arith.constant 0 : i32
    %c0_i32_0 = arith.constant 0 : i32
    %c0_i32_1 = arith.constant 0 : i32
    %c0_i32_2 = arith.constant 0 : i32
    return %c0_i32, %c0_i32_0, %c0_i32_1 : i32, i32, i32
  }
  func.func @transform_17(%arg0: i32) -> (i32, i32) {
    %c0_i32 = arith.constant 0 : i32
    %c0_i32_0 = arith.constant 0 : i32
    %c0_i32_1 = arith.constant 0 : i32
    return %c0_i32, %c0_i32_0 : i32, i32
  }
  func.func @transform_18(%arg0: i32) -> (i32, i32) {
    %c0_i32 = arith.constant 0 : i32
    %c0_i32_0 = arith.constant 0 : i32
    %c0_i32_1 = arith.constant 0 : i32
    return %c0_i32, %c0_i32_0 : i32, i32
  }
  func.func @transform_19(%arg0: i32) -> (i32, i32) {
    %c0_i32 = arith.constant 0 : i32
    %c0_i32_0 = arith.constant 0 : i32
    %c0_i32_1 = arith.constant 0 : i32
    return %c0_i32, %c0_i32_0 : i32, i32
  }
  func.func @transform_20(%arg0: i32) -> (i32, i32) {
    %c0_i32 = arith.constant 0 : i32
    %c0_i32_0 = arith.constant 0 : i32
    %c0_i32_1 = arith.constant 0 : i32
    return %c0_i32, %c0_i32_0 : i32, i32
  }
  func.func @transform_21(%arg0: i32) -> (i32, i32) {
    %c0_i32 = arith.constant 0 : i32
    %c0_i32_0 = arith.constant 0 : i32
    %c0_i32_1 = arith.constant 0 : i32
    return %c0_i32, %c0_i32_0 : i32, i32
  }
  func.func @transform_22(%arg0: i32) -> (i32, i32) {
    %c0_i32 = arith.constant 0 : i32
    %c0_i32_0 = arith.constant 0 : i32
    %c0_i32_1 = arith.constant 0 : i32
    return %c0_i32, %c0_i32_0 : i32, i32
  }
  func.func @transform_23(%arg0: i32) -> (i32, i32) {
    %c0_i32 = arith.constant 0 : i32
    %c0_i32_0 = arith.constant 0 : i32
    %c0_i32_1 = arith.constant 0 : i32
    return %c0_i32, %c0_i32_0 : i32, i32
  }
  func.func @transform_24(%arg0: i32) -> (i32, i32) {
    %c0_i32 = arith.constant 0 : i32
    %c0_i32_0 = arith.constant 0 : i32
    %c0_i32_1 = arith.constant 0 : i32
    return %c0_i32, %c0_i32_0 : i32, i32
  }
  func.func @transform_25(%arg0: i32) -> (i32, i32) {
    %c0_i32 = arith.constant 0 : i32
    %c0_i32_0 = arith.constant 0 : i32
    %c0_i32_1 = arith.constant 0 : i32
    return %c0_i32, %c0_i32_0 : i32, i32
  }
  func.func @transform_26(%arg0: i32) -> (i32, i32) {
    %c0_i32 = arith.constant 0 : i32
    %c0_i32_0 = arith.constant 0 : i32
    %c0_i32_1 = arith.constant 0 : i32
    return %c0_i32, %c0_i32_0 : i32, i32
  }
  func.func @transform_27(%arg0: i32) -> (i32, i32) {
    %c0_i32 = arith.constant 0 : i32
    %c0_i32_0 = arith.constant 0 : i32
    %c0_i32_1 = arith.constant 0 : i32
    return %c0_i32, %c0_i32_0 : i32, i32
  }
  func.func @transform_28(%arg0: i32) -> (i32, i32, i32) {
    %c0_i32 = arith.constant 0 : i32
    %c0_i32_0 = arith.constant 0 : i32
    %c0_i32_1 = arith.constant 0 : i32
    %c0_i32_2 = arith.constant 0 : i32
    return %c0_i32, %c0_i32_0, %c0_i32_1 : i32, i32, i32
  }
  func.func @transform_29(%arg0: i32) -> (i32, i32) {
    %c0_i32 = arith.constant 0 : i32
    %c0_i32_0 = arith.constant 0 : i32
    %c0_i32_1 = arith.constant 0 : i32
    return %c0_i32, %c0_i32_0 : i32, i32
  }
  func.func @transform_30(%arg0: i32) -> (i32, i32, i32) {
    %c0_i32 = arith.constant 0 : i32
    %c0_i32_0 = arith.constant 0 : i32
    %c0_i32_1 = arith.constant 0 : i32
    return %arg0, %c0_i32, %c0_i32_0 : i32, i32, i32
  }
}

</mosaic_0001>

<bundles_post_ra>
// kernel: morphset_forward.1
= control target key start
LH: loop header
LB: loop body
LE: loop exit
PB: predicated region body
PF: predicated region fallthrough
CT: control target
= control target key end

     0   :  { %s3291_s6 = smov 1   ;;  %s3292_s10 = smov 2   ;;  %s3963_s0 = inlined_call_operand.smem [shape: u32[31], index: -1, kind: input, shape index: {}] }
   0x1   :  { %s3334_s5 = sld [smem:[%s3963_s0]]   ;;  %s3293_s14 = smov 3  }
   0x2   :  { %s3339_s9 = sld [smem:[%s3963_s0 + %s3291_s6]]   ;;  %s3294_s18 = smov 4  }
   0x3   :  { %s3344_s13 = sld [smem:[%s3963_s0 + %s3292_s10]]   ;;  %s3295_s22 = smov 5  }
   0x4   :  { %s3349_s17 = sld [smem:[%s3963_s0 + %s3293_s14]]   ;;  %s3296_s26 = smov 6  }
   0x5   :  { %s3354_s21 = sld [smem:[%s3963_s0 + %s3294_s18]]   ;;  %s3297_s30 = smov 7  }
   0x6   :  { %s3359_s25 = sld [smem:[%s3963_s0 + %s3295_s22]]   ;;  %s3298_s4 = smov 8  }
   0x7   :  { %s3364_s29 = sld [smem:[%s3963_s0 + %s3296_s26]]   ;;  %s3299_s10 = smov 9  }
   0x8   :  { %3972 = sst [smem:[#allocation9_spill]] %s3339_s9  ;;  %s3300_s15 = smov 10  }
   0x9   :  { %s3369_s3 = sld [smem:[%s3963_s0 + %s3297_s30]]   ;;  %s3301_s20 = smov 11  }
   0xa   :  { %3973 = sst [smem:[#allocation10_spill]] %s3349_s17  ;;  %s3302_s26 = smov 12  }
   0xb   :  { %3974 = sst [smem:[#allocation11_spill]] %s3354_s21  ;;  %s3303_s1 = smov 13  }
   0xc   :  { %3975 = sst [smem:[#allocation12_spill]] %s3359_s25  ;;  %s3304_s7 = smov 14  }
   0xd   :  { %s3374_s8 = sld [smem:[%s3963_s0 + %s3298_s4]]   ;;  %s3306_s22 = smov 16  }
   0xe   :  { %s3379_s14 = sld [smem:[%s3963_s0 + %s3299_s10]]   ;;  %s3307_s28 = smov 17  }
   0xf   :  { %s3384_s19 = sld [smem:[%s3963_s0 + %s3300_s15]]   ;;  %s3305_s15 = smov 15  }
  0x10   :  { %s3389_s24 = sld [smem:[%s3963_s0 + %s3301_s20]]   ;;  %s3320_s10 = smov 30  }
  0x11   :  { %s3394_s30 = sld [smem:[%s3963_s0 + %s3302_s26]]  }
  0x12   :  { %s3399_s6 = sld [smem:[%s3963_s0 + %s3303_s1]]  }
  0x13   :  { %s3404_s12 = sld [smem:[%s3963_s0 + %s3304_s7]]   ;;  %s3308_s7 = smov 18  }
  0x14   :  { %s3409_s20 = sld [smem:[%s3963_s0 + %s3305_s15]]   ;;  %s3309_s15 = smov 19  }
  0x15   :  { %s3414_s27 = sld [smem:[%s3963_s0 + %s3306_s22]]   ;;  %s3310_s22 = smov 20  }
  0x16   :  { %s3419_s4 = sld [smem:[%s3963_s0 + %s3307_s28]]   ;;  %s3311_s28 = smov 21  }
  0x17   :  { %s3424_s25 = sld [smem:[%s3963_s0 + %s3308_s7]]   ;;  %s3312_s7 = smov 22  }
  0x18   :  { %3976 = sst [smem:[#allocation13_spill]] %s3399_s6 }
  0x19   :  { %3977 = sst [smem:[#allocation14_spill]] %s3404_s12 }
  0x1a   :  { %3978 = sst [smem:[#allocation15_spill]] %s3409_s20 }
  0x1b   :  { %3979 = sst [smem:[#allocation16_spill]] %s3414_s27 }
  0x1c   :  { %3980 = sst [smem:[#allocation17_spill]] %s3419_s4 }
  0x1d   :  { %3981 = sst [smem:[#allocation18_spill]] %s3424_s25 }
  0x1e   :  { %s3429_s21 = sld [smem:[%s3963_s0 + %s3309_s15]]   ;;  %s3313_s15 = smov 23  }
  0x1f   :  { %s3434_s27 = sld [smem:[%s3963_s0 + %s3310_s22]]   ;;  %s3314_s22 = smov 24  }
  0x20   :  { %s3439_s4 = sld [smem:[%s3963_s0 + %s3311_s28]]   ;;  %s3315_s28 = smov 25  }
  0x21   :  { %s3444_s25 = sld [smem:[%s3963_s0 + %s3312_s7]]   ;;  %s3316_s7 = smov 26  }
  0x24   :  { %3982 = sst [smem:[#allocation19_spill]] %s3429_s21 }
  0x25   :  { %3983 = sst [smem:[#allocation20_spill]] %s3434_s27 }
  0x26   :  { %3984 = sst [smem:[#allocation21_spill]] %s3439_s4 }
  0x27   :  { %3985 = sst [smem:[#allocation22_spill]] %s3444_s25 }
  0x28   :  { %s3449_s21 = sld [smem:[%s3963_s0 + %s3313_s15]]   ;;  %s3317_s15 = smov 27  }
  0x29   :  { %s3454_s27 = sld [smem:[%s3963_s0 + %s3314_s22]]   ;;  %s3318_s22 = smov 28  }
  0x2a   :  { %s3459_s4 = sld [smem:[%s3963_s0 + %s3315_s28]]   ;;  %s3319_s28 = smov 29  }
  0x2b   :  { %s3464_s25 = sld [smem:[%s3963_s0 + %s3316_s7]]  }
  0x2e   :  { %3986 = sst [smem:[#allocation23_spill]] %s3449_s21 }
  0x2f   :  { %3987 = sst [smem:[#allocation24_spill]] %s3454_s27 }
  0x30   :  { %3988 = sst [smem:[#allocation25_spill]] %s3459_s4 }
  0x31   :  { %3989 = sst [smem:[#allocation26_spill]] %s3464_s25 }
  0x32   :  { %s3469_s21 = sld [smem:[%s3963_s0 + %s3317_s15]]  }
  0x33   :  { %s3474_s27 = sld [smem:[%s3963_s0 + %s3318_s22]]  }
  0x34   :  { %s2696_s4 = sld [smem:[%s3963_s0 + %s3319_s28]]  }
  0x35   :  { %s3482_s25 = sld [smem:[%s3963_s0 + %s3320_s10]]  }
  0x38   :  { %3990 = sst [smem:[#allocation27_spill]] %s3469_s21 }
  0x39   :  { %3991 = sst [smem:[#allocation28_spill]] %s3474_s27 }
  0x3a   :  { %v66_v0 = vstv %s2696_s4 }
  0x3b   :  { %3992 = sst [smem:[#allocation29_spill]] %s3482_s25  ;;  %67 = vst [vmem:[#allocation2] sm:$0x1] %v66_v0 }
  0x3c   :  { %68 = vsyncpa [#allocation4], 0 }
  0x3d   :  { %70 = vsyncpa [#allocation4 + $0x1], 0 }
  0x3e   :  { %71 = vsyncpa [#allocation6], 0  ;;  %s3484_s15 = smov 0   ;;  %s3486_s16 = smov 0  }
  0x3f   :  { %s3488_s18 = smov 0   ;;  %s3490_s22 = smov 0  }
  0x40 LB: > { %s3993_s9 = sld [smem:[#allocation9_spill]]  ;;  %s3503_s0 = sadd.s32 4294967295, %s3289_s22   ;;  %s3277_s15 = sphi %s3484_s15, %s4019_s15   ;;  %s3289_s22 = sphi %s3490_s22, %s4022_s22   ;;  %s3285_s18 = sphi %s3488_s18, %s4021_s18   ;;  %s3281_s16 = sphi %s3486_s16, %s4020_s16  }
  0x41   : > { %p97_p0 = scmp.ne.s32.totalorder %s3281_s16, %s3277_s15  ;;  %p98_p1 = scmp.eq.s32.totalorder %s3503_s0, 0 }
  0x42   : > { %p2700_p2 = scmp.ge.s32.totalorder %s3289_s22, 1  ;;  %p743_p3 = scmp.lt.s32.totalorder %s3289_s22, 3 }
  0x43   : > { %p3511_p4 = por %p98_p1, %p97_p0  ;;  %s3321_s28 = smov [#allocation5]  }
  0x44   : > { %p3516_p5 = pnand %p2700_p2, %p743_p3  ;;  %s756_s1 = sshll.u32 %s3321_s28, 4  ;;  %s757_s1 = int_to_ptr.vmem [resolvable:$true] %s756_s1 }
  0x45   : > { %s3529_s10 = sadd.s32 1, %s3289_s22  }
  0x46   : > { %s754_s23 = sshll.u32 %s3993_s9, 4  ;;  %p3086_p6 = pneg %p3516_p5  ;;  %s755_s23 = int_to_ptr.hbm [resolvable:$true] %s754_s23 }
  0x47   : > { %s3191_s7 = sshra.s32 %s755_s23, 4  ;;  %s3198_s15 = scalar_lea.hbm %s3993_s9, 144  ;;  %s3192_s7 = int_to_ptr.hbm [resolvable:$true] %s3191_s7 }
  0x48   : > { %p3524_p7 = pnand %p3086_p6, %p98_p1  ;;  %s3193_s11 = scalar_lea.hbm %s3192_s7, 144 }
  0x49   : > { %p3194_p8 = scmp.ne.s32.totalorder %s3192_s7, %s3193_s11  ;;  %p3199_p12 = scmp.lt.s32.totalorder %s3192_s7, %s3993_s9 }
  0x4a   : > { %p3195_p9 = pneg %p3524_p7  ;;  %p3200_p13 = scmp.lt.s32.totalorder %s3198_s15, %s3193_s11 }
  0x4c   : > { %p3196_p10 = pnand %p3195_p9, %p3194_p8  ;;  %p3201_p0 = por %p3200_p13, %p3199_p12 }
  0x4e   : > { %p3197_p11 = pneg %p3196_p10 }
  0x50   : > { %p3202_p2 = pnand %p3201_p0, %p3197_p11 }
  0x52   : > { %3205 = shalt.err (!%p3202_p2)
}
  0x53   : > { %s3322_s28 = smov 64   ;;  %s3323_s25 = smov 4  }
  0x54   : > { %3089 = dma.hbm_to_vmem [thread:$0]  (!%p3524_p7), %s755_s23, 2304, %s757_s1, [#allocation6], %s3322_s28, %s3322_s28, %s3323_s25  }
  0x55   : > { %s81_s7 = ssub.s32 %s3289_s22, %s3529_s10  ;;  %s84_s11 = sadd.s32 1, %s3285_s18 }
  0x56   : > { %p82_p3 = scmp.eq.s32.totalorder %s81_s7, 0  ;;  %p91_p6 = scmp.ne.s32.totalorder %s3285_s18, %s3281_s16 }
  0x57   : > { %p92_p8 = scmp.eq.s32.totalorder %s3289_s22, 0  ;;  %p3095_p9 = scmp.lt.s32.totalorder %s3289_s22, 2 }
  0x58   : > { %s3545_s15 = scalar_select %p82_p3, %s3285_s18, %s84_s11  }
  0x59   : > { %p93_p10 = por %p92_p8, %p91_p6  ;;  %s854_s9 = sand.u32 1, %s3285_s18  }
  0x5a   : > { %s2703_s21 = sshll.u32 %s854_s9, 7  ;;  %s3022_s27 = sshll.u32 %s3289_s22, 7 }
  0x5b   : > { %s863_s20 = scalar_lea.hbm %s3334_s5, %s3022_s27  ;;  %s858_s6 = scalar_lea.vmem [#allocation3], %s2703_s21 }
  0x5c   : > { %s866_s12 = sshll.u32 %s858_s6, 4  ;;  %s864_s17 = sshll.u32 %s863_s20, 4  ;;  %s867_s12 = int_to_ptr.vmem [resolvable:$true] %s866_s12  ;;  %s865_s17 = int_to_ptr.hbm [resolvable:$true] %s864_s17 }
  0x5d   : > { %p3550_p7 = pnand %p3095_p9, %p93_p10  ;;  %s855_s23 = scalar_lea.sflag [#allocation4], %s854_s9 }
  0x5e   : > { %s3221_s1 = sshra.s32 %s865_s17, 4  ;;  %s3228_s27 = scalar_lea.hbm %s3334_s5, 256  ;;  %s3222_s1 = int_to_ptr.hbm [resolvable:$true] %s3221_s1 }
  0x5f   : > { %s3223_s2 = scalar_lea.hbm %s3222_s1, 128  ;;  %p3225_p12 = pneg %p3550_p7 }
  0x60   : > { %p3224_p11 = scmp.ne.s32.totalorder %s3222_s1, %s3223_s2  ;;  %p3229_p2 = scmp.lt.s32.totalorder %s3222_s1, %s3334_s5 }
  0x61   : > { %p3230_p3 = scmp.lt.s32.totalorder %s3228_s27, %s3223_s2 }
  0x62   : > { %p3226_p13 = pnand %p3225_p12, %p3224_p11 }
  0x63   : > { %p3231_p6 = por %p3230_p3, %p3229_p2 }
  0x64   : > { %p3227_p0 = pneg %p3226_p13 }
  0x66   : > { %p3232_p8 = pnand %p3231_p6, %p3227_p0 }
  0x68   : > { %3235 = shalt.err (!%p3232_p8)
}
  0x69   : > { %s3324_s21 = smov 128   ;;  %s3325_s6 = smov 8  }
  0x6a   : > { %3093 = dma.hbm_to_vmem [thread:$0]  (!%p3550_p7), %s865_s17, 2048, %s867_s12, %s855_s23, %s3324_s21, %s3324_s21, %s3325_s6  }
  0x6b   : > { %878 = sbr.rel (%p3516_p5) target bundleno = 3120 (0xc30), region = 140  ;;  %s880_s9 = sand.u32 (!%p3516_p5), 1, %s3281_s16  }
  0x6c   : > { %s2707_s20 = sshll.u32 (!%p3516_p5), %s880_s9, 7  ;;  %s881_s22 = scalar_lea.sflag (!%p3516_p5), [#allocation4], %s880_s9 }
  0x6d   : > { %s3563_s28 = scalar_lea.vmem (!%p3516_p5), [#allocation3], %s2707_s20 }
  0x70   : > { %3268 = dma.done.wait (%p3511_p4), %s881_s22, 2048  }
  0x71   : > { %3270 = vsyncadd (%p3511_p4), %s881_s22, 4294965248 }
  0x72   : > { %3272 = dma.done.wait (%p98_p1), [#allocation6], 2304  }
  0x73   : > { %3274 = vsyncadd (%p98_p1), [#allocation6], 4294964992  ;;  %v3574_v1 = vld [vmem:[%s3563_s28 + $0x70] sm:$0xff]  ;;  %v3577_v2 = vld [vmem:[%s3563_s28 + $0x78] sm:$0xff]  ;;  %vm1049_vm0 = vcmask 261120   ;;  %vm1077_vm1 = vcmask 1043456  }
  0x74   : > { %v3580_v3 = vld [vmem:[%s3563_s28 + $0x60] sm:$0xff]  ;;  %v1014_v4 = vpack.c.bf16 %v3577_v2, %v3574_v1  ;;  %v3585_v5 = vld [vmem:[%s3563_s28 + $0x68] sm:$0xff]  ;;  %v3590_v7 = vld [vmem:[%s3563_s28 + $0x50] sm:$0xff]  ;;  %vm1073_vm2 = vcmask 64512   ;;  %vm1179_vm7 = vcmask 1040384   ;;  %s3998_s17 = sld [smem:[#allocation10_spill]] }
  0x75   : > { %v1013_v6 = vpack.c.bf16 %v3585_v5, %v3580_v3  ;;  %v3593_v8 = vld [vmem:[%s3563_s28 + $0x58] sm:$0xff]  ;;  %v3034_v9 = vld [vmem:[%s3364_s29 + $0x8] sm:$0xff]  ;;  %v3607_v14 = vld [vmem:[%s3563_s28 + $0x30] sm:$0xff]  ;;  %s3999_s12 = sld [smem:[#allocation14_spill]]  ;;  %vm1380_vm8 = vcmask 130048   ;;  %vm1154_vm9 = vcmask 15360  }
  0x76   : > { %1015 = vmatpush.bf16.msra.mxu0 %v1014_v4  ;;  %v3597_v10 = vld [vmem:[%s3563_s28 + $0x40] sm:$0xff]  ;;  %v3600_v11 = vld [vmem:[%s3563_s28 + $0x48] sm:$0xff]  ;;  %v1012_v12 = vpack.c.bf16 %v3593_v8, %v3590_v7  ;;  %1059 = vmatpush.bf16.msra.mxu1 %v3034_v9  ;;  %v3610_v15 = vld [vmem:[%s3563_s28 + $0x38] sm:$0xff]  ;;  %s4000_s4 = sld [smem:[#allocation13_spill]]  ;;  %vm1408_vm10 = vcmask 1041408   ;;  %vm1404_vm11 = vcmask 31744  }
  0x77   : > { %v1011_v13 = vpack.c.bf16 %v3600_v11, %v3597_v10  ;;  %v1010_v16 = vpack.c.bf16 %v3610_v15, %v3607_v14  ;;  %v3615_v17 = vld [vmem:[%s3563_s28 + $0x20] sm:$0xff]  ;;  %v3618_v18 = vld [vmem:[%s3563_s28 + $0x28] sm:$0xff]  ;;  %v3623_v20 = vld [vmem:[%s3563_s28 + $0x10] sm:$0xff]  ;;  %s4001_s26 = sld [smem:[#allocation15_spill]]  ;;  %p965_p1 = scmp.lt.s32.totalorder %s3503_s0, 1 }
  0x78   : > { %v1009_v19 = vpack.c.bf16 %v3618_v18, %v3615_v17  ;;  %v3626_v21 = vld [vmem:[%s3563_s28 + $0x18] sm:$0xff]  ;;  %v3631_v23 = vld [vmem:[%s3563_s28] sm:$0xff]  ;;  %v3634_v24 = vld [vmem:[%s3563_s28 + $0x8] sm:$0xff]  ;;  %s4002_s7 = sld [smem:[#allocation16_spill]] }
  0x79   : > { %v1008_v22 = vpack.c.bf16 %v3626_v21, %v3623_v20  ;;  %v1007_v25 = vpack.c.bf16 %v3634_v24, %v3631_v23  ;;  %v969_v26 = vld [vmem:[%s3344_s13] sm:$0x1]  ;;  %v3036_v39 = vld [vmem:[%s3384_s19 + $0x8] sm:$0xff]  ;;  %s4003_s11 = sld [smem:[#allocation18_spill]]  ;;  %s4024_s0 = smov (!%p965_p1, %s3503_s0), 1 }
  0x7a   : > { %1016 = vmatpush.bf16.msra.mxu0 %v1013_v6  ;;  %v3033_v27 = vld [vmem:[%s3364_s29] sm:$0xff]  ;;  %s4004_s25 = sld [smem:[#allocation17_spill]] }
  0x7b   : > { %1060 = vmatpush.bf16.msra.mxu1 %v3033_v27  ;;  %v1067_v31 = vld [vmem:[%s3374_s8] sm:$0xf]  ;;  %s4005_s23 = sld [smem:[#allocation11_spill]] }
  0x7c   : > { %v1079_v32 = vsel %vm1077_vm1, %v1067_v31, 0  ;;  %v3164_v33 = vld [vmem:[%s3369_s3] ss:$0 sm:$0xff]  ;;  %v3674_v31 = vld [vmem:[%s3998_s17 + $0x18] sm:$0xff]  ;;  %s4006_s1 = sld [smem:[#allocation20_spill]] }
  0x7d   : > { %1088 = vmatpush.bf16.msra.mxu2 %v1079_v32  ;;  %v3035_v40 = vld [vmem:[%s3384_s19] sm:$0xff]  ;;  %s4007_s2 = sld [smem:[#allocation19_spill]] }
  0x7e   : > { %1017 = vmatpush.bf16.msra.mxu0 %v1012_v12  ;;  %v3165_v41 = vld [vmem:[%s3379_s14] ss:$0 sm:$0xff]  ;;  %s4008_s27 = sld [smem:[#allocation21_spill]] }
  0x7f   : > { %1360 = vmatpush.bf16.msrb.mxu1 %v3036_v39  ;;  %v3037_v62 = vld [vmem:[%s3394_s30] sm:$0xff]  ;;  %s4009_s21 = sld [smem:[#allocation22_spill]] }
  0x80   : > { %v3652_v63 = vld [vmem:[%s3389_s24] ss:$0 sm:$0xff]  ;;  %s4010_s6 = sld [smem:[#allocation12_spill]] }
  0x81   : > { %1306 = vmatpush.bf16.msrb.mxu2 %v3036_v39  ;;  %v3657_v12 = vld [vmem:[%s3998_s17] sm:$0xff]  ;;  %s4011_s9 = sld [smem:[#allocation24_spill]] }
  0x82   : > { %1018 = vmatpush.bf16.msra.mxu0 %v1011_v13  ;;  %v1398_v13 = vld [vmem:[%s3999_s12] sm:$0x3]  ;;  %s4012_s20 = sld [smem:[#allocation23_spill]] }
  0x83   : > { %1361 = vmatpush.bf16.msrb.mxu1 %v3035_v40  ;;  %v3679_v32 = vld [vmem:[%s3998_s17 + $0x20] sm:$0xff]  ;;  %s4013_s22 = sld [smem:[#allocation26_spill]] }
  0x84   : > { %s4014_s28 = sld [smem:[#allocation25_spill]] }
  0x85   : > { %1307 = vmatpush.bf16.msrb.mxu2 %v3035_v40  ;;  %s4015_s12 = sld [smem:[#allocation28_spill]] }
  0x86   : > { %1019 = vmatpush.bf16.msra.mxu0 %v1010_v16  ;;  %v1410_v16 = vsel %vm1408_vm10, %v1398_v13, 0  ;;  %vm2598_vm10 = vcmask 0  }
  0x8a   : > { %1020 = vmatpush.bf16.msra.mxu0 %v1009_v19  ;;  %v3663_v19 = vld [vmem:[%s3998_s17 + $0x8] sm:$0xff] }
  0x8e   : > { %1021 = vmatpush.bf16.msra.mxu0 %v1008_v22  ;;  %v3167_v22 = vld [vmem:[%s4000_s4] ss:$0 sm:$0xff]  ;;  %s4016_s4 = sld [smem:[#allocation27_spill]] }
  0x92   : > { %1022 = vmatpush.bf16.msra.mxu0 %v1007_v25  ;;  %v3669_v25 = vld [vmem:[%s3998_s17 + $0x10] sm:$0xff] }
  0x95   : > { %1023 = vmatmul.bf16.vlgmr.msra.gmra.mxu0 %v969_v26 }
  0x96   : > { %1419 = vmatpush.bf16.msrb.mxu0 %v1410_v16 }
 0x112   : > { %v1024_v28 = vpop.f32.mrf.mxu0 }
 0x113   : > { %v1032_v29 = vpack.c.bf16 %v1024_v28, %v1024_v28 }
 0x115   : > { %2717 = vmatmul.msk.bf16.vlgmr.msra.gmra.mxu1 %vm1049_vm0, %v1032_v29 }
 0x116   : > { %1391 = vmatpush.bf16.msra.mxu1 %v3037_v62 }
 0x11a   : > { %v1026_v30 = vpop.f32.mrf.mxu0 }
 0x192   : > { %v1062_v34 = vpop.f32.mrf.mxu1 }
 0x193   : > { %v1063_v35 = vadd.f32 %v3164_v33, %v1062_v34  ;;  %v3684_v33 = vld [vmem:[%s3998_s17 + $0x28] sm:$0xff]  ;;  %v3689_v34 = vld [vmem:[%s3998_s17 + $0x30] sm:$0xff] }
 0x195   : > { %v1066_v36 = vmax.f32 %v1063_v35, 0.0  ;;  %v3694_v35 = vld [vmem:[%s3998_s17 + $0x38] sm:$0xff] }
 0x197   : > { %v1068_v37 = vpack.c.bf16 %v1066_v36, %v1066_v36 }
 0x199   : > { %2718 = vmatmul.msk.bf16.vlgmr.msra.gmra.mxu2 %vm1073_vm2, %v1068_v37 }
 0x19a   : > { %v1064_v38 = vpop.f32.mrf.mxu1 }
 0x21c   : > { %v1090_v42 = vpop.f32.mrf.mxu2 }
 0x21d   : > { %v1091_v43 = vadd.f32 %v3165_v41, %v1090_v42 }
 0x21f   : > { %v2719_v44 = vmul.f32 -1.442695, %v1091_v43 }
 0x221   : > { %3175 = vpow2.f32 %v2719_v44 }
 0x224   : > { %v1092_v45 = vpop.f32.mrf.mxu2 }
 0x227   : > { %v3176_v46 = vpop.eup %3175 }
 0x228   : > { %v1097_v47 = vadd.f32 1.0, %v3176_v46  ;;  %v3168_v46 = vld [vmem:[%s4001_s26] ss:$0 sm:$0xff]  ;;  %s4017_s26 = sld [smem:[#allocation29_spill]] }
 0x22a   : > { %3177 = vrcp.f32 %v1097_v47  ;;  %v1109_v51 = vand.u32 2147483648, %v1097_v47  ;;  %v1107_v53 = vand.u32 2147483647, %v1097_v47  ;;  %vm1103_vm4 = vweird.f32 %v1097_v47 }
 0x22c   : > { %v1110_v55 = vor.u32 1.1754944e-38, %v1109_v51  ;;  %vm1108_vm6 = vcmp.eq.f32.partialorder %v1107_v53, 8.507059e+37 }
 0x230   : > { %v3178_v48 = vpop.eup %3177 }
 0x231   : > { %v1099_v49 = vmul.f32 %v3178_v48, %v1097_v47  ;;  %vm1104_vm3 = vweird.f32 %v3178_v48 }
 0x232   : > { %vm1105_vm5 = vmor %vm1103_vm4, %vm1104_vm3  ;;  %vm2258_vm3 = vcmask 523264  }
 0x233   : > { %v1100_v50 = vsub.f32 1.0, %v1099_v49 }
 0x235   : > { %v1101_v52 = vmul.f32 %v3178_v48, %v1100_v50 }
 0x237   : > { %v1102_v54 = vadd.f32 %v3178_v48, %v1101_v52 }
 0x239   : > { %v1106_v56 = vsel %vm1105_vm5, %v3178_v48, %v1102_v54 }
 0x23a   : > { %v1111_v57 = vsel %vm1108_vm6, %v1110_v55, %v1106_v56 }
 0x23b   : > { %v1113_v58 = vpack.c.bf16 %v1111_v57, %v1111_v57  ;;  %v1349_v59 = vmul.f32 %v1111_v57, %v1024_v28 }
 0x23d   : > { %v1181_v60 = vsel %vm1179_vm7, %v1113_v58, 0  ;;  %v1350_v61 = vpack.c.bf16 %v1349_v59, %v1349_v59 }
 0x23e   : > { %1190 = vmatpush.bf16.msra.mxu3 %v1181_v60 }
 0x23f   : > { %2776 = vmatmul.msk.bf16.vlgmr.msrb.gmra.mxu1 %vm1049_vm0, %v1350_v61 }
 0x241   : > { %2752 = vmatmul.msk.bf16.vlgmr.msra.gmra.mxu3 %vm1154_vm9, %v3657_v12 }
 0x251   : > { %2753 = vmatmul.msk.bf16.gmra.mxu3 %vm1154_vm9, %v3663_v19 }
 0x261   : > { %2754 = vmatmul.msk.bf16.gmra.mxu3 %vm1154_vm9, %v3669_v25 }
 0x271   : > { %2755 = vmatmul.msk.bf16.gmra.mxu3 %vm1154_vm9, %v3674_v31 }
 0x281   : > { %2756 = vmatmul.msk.bf16.gmra.mxu3 %vm1154_vm9, %v3679_v32 }
 0x291   : > { %2757 = vmatmul.msk.bf16.gmra.mxu3 %vm1154_vm9, %v3684_v33 }
 0x2a1   : > { %2758 = vmatmul.msk.bf16.gmra.mxu3 %vm1154_vm9, %v3689_v34 }
 0x2b1   : > { %2759 = vmatmul.msk.bf16.gmra.mxu3 %vm1154_vm9, %v3694_v35 }
 0x2bc   : > { %v1363_v0 = vpop.f32.mrf.mxu1 }
 0x2bd   : > { %v1364_v4 = vadd.f32 %v3652_v63, %v1363_v0 }
 0x2bf   : > { %v1369_v6 = vpack.c.bf16 %v1364_v4, %v1364_v4 }
 0x2c1   : > { %2781 = vmatmul.msk.bf16.vlgmr.msra.gmra.mxu1 %vm1380_vm8, %v1369_v6 }
 0x2c4   : > { %v1365_v9 = vpop.f32.mrf.mxu1  ;;  %v1192_v36 = vpop.f32.mrf.mxu3 }
 0x2c5   : > { %v1232_v37 = vmul.f32 %v1192_v36, %v3631_v23 }
 0x2cc   : > { %v1194_v38 = vpop.f32.mrf.mxu3 }
 0x2cd   : > { %v1233_v39 = vmul.f32 %v1194_v38, %v3634_v24 }
 0x2cf   : > { %v1252_v40 = vpack.c.bf16 %v1233_v39, %v1232_v37 }
 0x2d1   : > { %2768 = vmatmul.msk.bf16.vlgmr.msrb.gmra.mxu2 %vm1049_vm0, %v1252_v40 }
 0x2d4   : > { %v1197_v41 = vpop.f32.mrf.mxu3 }
 0x2d5   : > { %v1234_v42 = vmul.f32 %v1197_v41, %v3623_v20 }
 0x2dc   : > { %v1199_v43 = vpop.f32.mrf.mxu3 }
 0x2dd   : > { %v1235_v44 = vmul.f32 %v1199_v43, %v3626_v21 }
 0x2df   : > { %v1253_v45 = vpack.c.bf16 %v1235_v44, %v1234_v42 }
 0x2e1   : > { %2769 = vmatmul.msk.bf16.gmra.mxu2 %vm1049_vm0, %v1253_v45 }
 0x2e4   : > { %v1202_v48 = vpop.f32.mrf.mxu3 }
 0x2e5   : > { %v1236_v24 = vmul.f32 %v1202_v48, %v3615_v17 }
 0x2ec   : > { %v1204_v51 = vpop.f32.mrf.mxu3 }
 0x2ed   : > { %v1237_v52 = vmul.f32 %v1204_v51, %v3618_v18 }
 0x2ef   : > { %v1254_v20 = vpack.c.bf16 %v1237_v52, %v1236_v24 }
 0x2f1   : > { %2770 = vmatmul.msk.bf16.gmra.mxu2 %vm1049_vm0, %v1254_v20 }
 0x2f4   : > { %v1207_v21 = vpop.f32.mrf.mxu3 }
 0x2f5   : > { %v1238_v58 = vmul.f32 %v1207_v21, %v3607_v14 }
 0x2fc   : > { %v1209_v60 = vpop.f32.mrf.mxu3 }
 0x2fd   : > { %v1239_v62 = vmul.f32 %v1209_v60, %v3610_v15 }
 0x2ff   : > { %v1255_v0 = vpack.c.bf16 %v1239_v62, %v1238_v58 }
 0x301   : > { %2771 = vmatmul.msk.bf16.gmra.mxu2 %vm1049_vm0, %v1255_v0 }
 0x304   : > { %v1212_v16 = vpop.f32.mrf.mxu3 }
 0x305   : > { %v1240_v15 = vmul.f32 %v1212_v16, %v3597_v10 }
 0x33e   : > { %v1393_v26 = vpop.f32.mrf.mxu1 }
 0x33f   : > { %v1394_v27 = vadd.f32 %v3167_v22, %v1393_v26  ;;  %v1214_v22 = vpop.f32.mrf.mxu3 }
 0x340   : > { %v1241_v26 = vmul.f32 %v1214_v22, %v3600_v11 }
 0x341   : > { %v1397_v28 = vmax.f32 %v1394_v27, 0.0 }
 0x342   : > { %v1256_v27 = vpack.c.bf16 %v1241_v26, %v1240_v15 }
 0x343   : > { %v1399_v29 = vpack.c.bf16 %v1397_v28, %v1397_v28 }
 0x344   : > { %2772 = vmatmul.msk.bf16.gmra.mxu2 %vm1049_vm0, %v1256_v27 }
 0x345   : > { %2782 = vmatmul.msk.bf16.vlgmr.msrb.gmra.mxu0 %vm1404_vm11, %v1399_v29 }
 0x346   : > { %v1395_v30 = vpop.f32.mrf.mxu1 }
 0x347   : > { %v1217_v28 = vpop.f32.mrf.mxu3 }
 0x348   : > { %v1242_v29 = vmul.f32 %v1217_v28, %v3590_v7 }
 0x34f   : > { %v1219_v30 = vpop.f32.mrf.mxu3 }
 0x350   : > { %v1243_v36 = vmul.f32 %v1219_v30, %v3593_v8 }
 0x352   : > { %v1257_v37 = vpack.c.bf16 %v1243_v36, %v1242_v29 }
 0x354   : > { %2773 = vmatmul.msk.bf16.gmra.mxu2 %vm1049_vm0, %v1257_v37 }
 0x3c2   : > { %v1421_v47 = vpop.f32.mrf.mxu0 }
 0x3c3   : > { %v1422_v49 = vadd.f32 %v3168_v46, %v1421_v47 }
 0x3c5   : > { %v2783_v23 = vmul.f32 -1.442695, %v1422_v49 }
 0x3c7   : > { %3179 = vpow2.f32 %v2783_v23 }
 0x3ca   : > { %v1423_v50 = vpop.f32.mrf.mxu0 }
 0x3cd   : > { %v3180_v53 = vpop.eup %3179 }
 0x3ce   : > { %v1428_v54 = vadd.f32 1.0, %v3180_v53 }
 0x3d0   : > { %3181 = vrcp.f32 %v1428_v54  ;;  %v1440_v59 = vand.u32 2147483648, %v1428_v54  ;;  %v1438_v17 = vand.u32 2147483647, %v1428_v54  ;;  %vm1434_vm13 = vweird.f32 %v1428_v54 }
 0x3d2   : > { %v1441_v4 = vor.u32 1.1754944e-38, %v1440_v59  ;;  %vm1439_vm15 = vcmp.eq.f32.partialorder %v1438_v17, 8.507059e+37 }
 0x3d6   : > { %v3182_v55 = vpop.eup %3181 }
 0x3d7   : > { %v1430_v56 = vmul.f32 %v3182_v55, %v1428_v54  ;;  %vm1435_vm12 = vweird.f32 %v3182_v55 }
 0x3d8   : > { %vm1436_vm14 = vmor %vm1434_vm13, %vm1435_vm12 }
 0x3d9   : > { %v1431_v57 = vsub.f32 1.0, %v1430_v56 }
 0x3db   : > { %v1432_v61 = vmul.f32 %v3182_v55, %v1431_v57 }
 0x3dd   : > { %v1433_v18 = vadd.f32 %v3182_v55, %v1432_v61 }
 0x3df   : > { %v1437_v6 = vsel %vm1436_vm14, %v3182_v55, %v1433_v18 }
 0x3e0   : > { %v1442_v9 = vsel %vm1439_vm15, %v1441_v4, %v1437_v6 }
 0x3e1   : > { %v1444_v13 = vpack.c.bf16 %v1442_v9, %v1442_v9 }
 0x3e3   : > { %v1446_v14 = vsel %vm1179_vm7, %v1444_v13, 0 }
 0x3e4   : > { %1455 = vmatpush.bf16.msrb.mxu1 %v1446_v14 }
 0x3e7   : > { %2784 = vmatmul.msk.bf16.vlgmr.msrb.gmra.mxu1 %vm1154_vm9, %v3657_v12  ;;  %v1222_v12 = vpop.f32.mrf.mxu3 }
 0x3e8   : > { %v1244_v10 = vmul.f32 %v1222_v12, %v3580_v3  ;;  %v1309_v3 = vpop.f32.mrf.mxu2 }
 0x3ef   : > { %v1224_v11 = vpop.f32.mrf.mxu3 }
 0x3f0   : > { %v1245_v38 = vmul.f32 %v1224_v11, %v3585_v5  ;;  %v3738_v5 = vpop.f32.mrf.mxu2 }
 0x3f2   : > { %v1258_v39 = vpack.c.bf16 %v1245_v38, %v1244_v10 }
 0x3f4   : > { %2774 = vmatmul.msk.bf16.gmra.mxu2 %vm1049_vm0, %v1258_v39 }
 0x3f7   : > { %2785 = vmatmul.msk.bf16.gmra.mxu1 %vm1154_vm9, %v3663_v19  ;;  %v1227_v19 = vpop.f32.mrf.mxu3 }
 0x3f8   : > { %v1246_v7 = vmul.f32 %v1227_v19, %v3574_v1 }
 0x3ff   : > { %v1229_v8 = vpop.f32.mrf.mxu3 }
 0x400   : > { %v1247_v40 = vmul.f32 %v1229_v8, %v3577_v2  ;;  %v1310_v2 = vadd.f32 %v3652_v63, %v1309_v3 }
 0x402   : > { %v1259_v41 = vpack.c.bf16 %v1247_v40, %v1246_v7 }
 0x404   : > { %2775 = vmatmul.msk.bf16.gmra.mxu2 %vm1049_vm0, %v1259_v41 }
 0x407   : > { %2786 = vmatmul.msk.bf16.gmra.mxu1 %vm1154_vm9, %v3669_v25  ;;  %v1314_v25 = vpop.f32.mrf.mxu2 }
 0x40f   : > { %v3742_v1 = vpop.f32.mrf.mxu2 }
 0x417   : > { %2787 = vmatmul.msk.bf16.gmra.mxu1 %vm1154_vm9, %v3674_v31 }
 0x427   : > { %2788 = vmatmul.msk.bf16.gmra.mxu1 %vm1154_vm9, %v3679_v32  ;;  %v1319_v32 = vpop.f32.mrf.mxu2 }
 0x437   : > { %2789 = vmatmul.msk.bf16.gmra.mxu1 %vm1154_vm9, %v3684_v33  ;;  %v1315_v33 = vadd.f32 %v3652_v63, %v1314_v25 }
 0x447   : > { %2790 = vmatmul.msk.bf16.gmra.mxu1 %vm1154_vm9, %v3689_v34  ;;  %v1321_v34 = vpop.f32.mrf.mxu2 }
 0x448   : > { %v1322_v41 = vadd.f32 %v3652_v63, %v1321_v34 }
 0x44f   : > { %v1324_v47 = vpop.f32.mrf.mxu2 }
 0x450   : > { %v1325_v51 = vadd.f32 %v3652_v63, %v1324_v47  ;;  %v3045_v47 = vld [vmem:[#allocation5 + $0x28] sm:$0xff] }
 0x457   : > { %2791 = vmatmul.msk.bf16.gmra.mxu1 %vm1154_vm9, %v3694_v35  ;;  %v1320_v35 = vadd.f32 %v3652_v63, %v1319_v32  ;;  %v1326_v23 = vpop.f32.mrf.mxu2 }
 0x458   : > { %v1327_v7 = vadd.f32 %v3652_v63, %v1326_v23 }
 0x45f   : > { %v1329_v50 = vpop.f32.mrf.mxu2 }
 0x460   : > { %v1330_v21 = vadd.f32 %v3652_v63, %v1329_v50  ;;  %v3051_v50 = vld [vmem:[#allocation5 + $0x48] sm:$0xff] }
 0x464   : > { %v1457_v31 = vpop.f32.mrf.mxu1 }
 0x465   : > { %v3745_v42 = vmul.f32 %v1457_v31, %v1310_v2  ;;  %v1317_v2 = vadd.f32 %v3652_v63, %v3742_v1 }
 0x467   : > { %v1331_v20 = vpop.f32.mrf.mxu2 }
 0x468   : > { %v1332_v11 = vadd.f32 %v3652_v63, %v1331_v20  ;;  %v3056_v20 = vld [vmem:[#allocation5 + $0x60] sm:$0xff] }
 0x46c   : > { %v3747_v43 = vpop.f32.mrf.mxu1 }
 0x46f   : > { %v1334_v57 = vpop.f32.mrf.mxu2 }
 0x470   : > { %v1335_v37 = vadd.f32 %v3652_v63, %v1334_v57 }
 0x474   : > { %v1462_v44 = vpop.f32.mrf.mxu1 }
 0x475   : > { %v3750_v45 = vmul.f32 %v1462_v44, %v1315_v33  ;;  %v1312_v33 = vadd.f32 %v3652_v63, %v3738_v5  ;;  %v3050_v5 = vld [vmem:[#allocation5 + $0x40] sm:$0xff] }
 0x477   : > { %v1336_v59 = vpop.f32.mrf.mxu2  ;;  %v1498_v1 = vmul.f32 %v3747_v43, %v1312_v33  ;;  %v3040_v43 = vld [vmem:[%s4002_s7] sm:$0xff] }
 0x478   : > { %v1337_v30 = vadd.f32 %v3652_v63, %v1336_v59 }
 0x479   : > { %v3812_v34 = vpack.c.bf16 %v1498_v1, %v3745_v42  ;;  %v3039_v42 = vld [vmem:[#allocation5 + $0x8] sm:$0xff] }
 0x47c   : > { %v3752_v46 = vpop.f32.mrf.mxu1 }
 0x47d   : > { %v1500_v31 = vmul.f32 %v3752_v46, %v1317_v2  ;;  %v3041_v46 = vld [vmem:[#allocation5 + $0x10] sm:$0xff] }
 0x47f   : > { %v1339_v61 = vpop.f32.mrf.mxu2  ;;  %v3806_v44 = vpack.c.bf16 %v1500_v31, %v3750_v45  ;;  %v3044_v45 = vld [vmem:[#allocation5 + $0x20] sm:$0xff] }
 0x480   : > { %v1340_v27 = vadd.f32 %v3652_v63, %v1339_v61  ;;  %v3048_v61 = vld [vmem:[#allocation5 + $0x38] sm:$0xff] }
 0x484   : > { %v1467_v48 = vpop.f32.mrf.mxu1 }
 0x485   : > { %v3755_v49 = vmul.f32 %v1467_v48, %v1320_v35  ;;  %v3042_v35 = vld [vmem:[#allocation5 + $0x18] sm:$0xff]  ;;  %v3043_v48 = vld [vmem:[%s4002_s7 + $0x8] sm:$0xff] }
 0x486   : > { %1620 = vmatpush.bf16.msrb.mxu3 %v3043_v48  ;;  %v3064_v48 = vld [vmem:[%s4002_s7 + $0x40] sm:$0xff] }
 0x487   : > { %v1341_v62 = vpop.f32.mrf.mxu2 }
 0x488   : > { %v1342_v15 = vadd.f32 %v3652_v63, %v1341_v62 }
 0x48c   : > { %v1469_v24 = vpop.f32.mrf.mxu1 }
 0x48d   : > { %v1502_v3 = vmul.f32 %v1469_v24, %v1322_v41 }
 0x48f   : > { %v1344_v4 = vpop.f32.mrf.mxu2  ;;  %v3797_v32 = vpack.c.bf16 %v1502_v3, %v3755_v49 }
 0x490   : > { %v1345_v13 = vadd.f32 %v3652_v63, %v1344_v4 }
 0x494   : > { %v1472_v52 = vpop.f32.mrf.mxu1 }
 0x495   : > { %v1503_v53 = vmul.f32 %v1472_v52, %v1325_v51 }
 0x497   : > { %v1346_v9 = vpop.f32.mrf.mxu2 }
 0x498   : > { %v1347_v16 = vadd.f32 %v3652_v63, %v1346_v9  ;;  %v3038_v63 = vld [vmem:[#allocation5] sm:$0xff] }
 0x49c   : > { %v1474_v54 = vpop.f32.mrf.mxu1 }
 0x49d   : > { %v1504_v8 = vmul.f32 %v1474_v54, %v1327_v7 }
 0x49f   : > { %v3788_v25 = vpack.c.bf16 %v1504_v8, %v1503_v53  ;;  %v3058_v8 = vld [vmem:[%s4002_s7 + $0x30] sm:$0xff] }
 0x4a4   : > { %v1477_v55 = vpop.f32.mrf.mxu1 }
 0x4a5   : > { %v1505_v56 = vmul.f32 %v1477_v55, %v1330_v21  ;;  %v3047_v21 = vld [vmem:[#allocation5 + $0x30] sm:$0xff] }
 0x4a6   : > { %v3046_v55 = vld [vmem:[%s4002_s7 + $0x10] sm:$0xff] }
 0x4a7   : > { %1723 = vmatpush.bf16.msra.mxu3 %v3046_v55 }
 0x4ac   : > { %v1479_v58 = vpop.f32.mrf.mxu1 }
 0x4ad   : > { %v1506_v39 = vmul.f32 %v1479_v58, %v1332_v11  ;;  %v3057_v58 = vld [vmem:[#allocation5 + $0x68] sm:$0xff] }
 0x4af   : > { %v3782_v40 = vpack.c.bf16 %v1506_v39, %v1505_v56 }
 0x4b4   : > { %v1482_v60 = vpop.f32.mrf.mxu1 }
 0x4b5   : > { %v1507_v38 = vmul.f32 %v1482_v60, %v1335_v37  ;;  %v3049_v37 = vld [vmem:[%s4002_s7 + $0x18] sm:$0xff] }
 0x4bc   : > { %v1484_v17 = vpop.f32.mrf.mxu1 }
 0x4bd   : > { %v1508_v12 = vmul.f32 %v1484_v17, %v1337_v30 }
 0x4bf   : > { %v3776_v19 = vpack.c.bf16 %v1508_v12, %v1507_v38 }
 0x4c4   : > { %v1487_v18 = vpop.f32.mrf.mxu1 }
 0x4c5   : > { %v1509_v36 = vmul.f32 %v1487_v18, %v1340_v27  ;;  %v3062_v18 = vld [vmem:[#allocation5 + $0x80] sm:$0xff] }
 0x4cc   : > { %v1489_v0 = vpop.f32.mrf.mxu1 }
 0x4cd   : > { %v1510_v28 = vmul.f32 %v1489_v0, %v1342_v15  ;;  %v3054_v15 = vld [vmem:[#allocation5 + $0x58] sm:$0xff] }
 0x4cf   : > { %v3770_v10 = vpack.c.bf16 %v1510_v28, %v1509_v36 }
 0x4d4   : > { %v1492_v6 = vpop.f32.mrf.mxu1 }
 0x4d5   : > { %v1511_v22 = vmul.f32 %v1492_v6, %v1345_v13  ;;  %v3053_v6 = vld [vmem:[#allocation5 + $0x50] sm:$0xff]  ;;  %v3063_v13 = vld [vmem:[#allocation5 + $0x88] sm:$0xff] }
 0x4dc   : > { %v1494_v14 = vpop.f32.mrf.mxu1 }
 0x4dd   : > { %v1512_v26 = vmul.f32 %v1494_v14, %v1347_v16 }
 0x4df   : > { %v3763_v29 = vpack.c.bf16 %v1512_v26, %v1511_v22  ;;  %v3059_v22 = vld [vmem:[#allocation5 + $0x70] sm:$0xff]  ;;  %v3060_v26 = vld [vmem:[#allocation5 + $0x78] sm:$0xff] }
 0x4e1   : > { %1537 = vmatpush.bf16.msra.mxu0 %v3763_v29  ;;  %1680 = vmatpush.bf16.msra.mxu2 %v3763_v29 }
 0x4e2   : > { %1832 = vmatpush.bf16.msra.mxu1 %v3763_v29 }
 0x4e5   : > { %1538 = vmatpush.bf16.msra.mxu0 %v3770_v10  ;;  %1681 = vmatpush.bf16.msra.mxu2 %v3770_v10 }
 0x4e6   : > { %1833 = vmatpush.bf16.msra.mxu1 %v3770_v10 }
 0x4e9   : > { %1539 = vmatpush.bf16.msra.mxu0 %v3776_v19  ;;  %1682 = vmatpush.bf16.msra.mxu2 %v3776_v19 }
 0x4ea   : > { %1834 = vmatpush.bf16.msra.mxu1 %v3776_v19 }
 0x4ed   : > { %1540 = vmatpush.bf16.msra.mxu0 %v3782_v40  ;;  %1683 = vmatpush.bf16.msra.mxu2 %v3782_v40 }
 0x4ee   : > { %1835 = vmatpush.bf16.msra.mxu1 %v3782_v40 }
 0x4f1   : > { %1541 = vmatpush.bf16.msra.mxu0 %v3788_v25  ;;  %1684 = vmatpush.bf16.msra.mxu2 %v3788_v25 }
 0x4f2   : > { %1836 = vmatpush.bf16.msra.mxu1 %v3788_v25 }
 0x4f5   : > { %1542 = vmatpush.bf16.msra.mxu0 %v3797_v32  ;;  %1685 = vmatpush.bf16.msra.mxu2 %v3797_v32 }
 0x4f6   : > { %1837 = vmatpush.bf16.msra.mxu1 %v3797_v32 }
 0x4f9   : > { %1543 = vmatpush.bf16.msra.mxu0 %v3806_v44  ;;  %1686 = vmatpush.bf16.msra.mxu2 %v3806_v44 }
 0x4fa   : > { %1838 = vmatpush.bf16.msra.mxu1 %v3806_v44 }
 0x4fd   : > { %1544 = vmatpush.bf16.msra.mxu0 %v3812_v34  ;;  %1687 = vmatpush.bf16.msra.mxu2 %v3812_v34 }
 0x4fe   : > { %1839 = vmatpush.bf16.msra.mxu1 %v3812_v34 }
 0x500   : > { %1545 = vmatmul.bf16.vlgmr.msra.gmra.mxu0 %v3038_v63  ;;  %1688 = vmatmul.bf16.vlgmr.msra.gmra.mxu2 %v3044_v45 }
 0x501   : > { %1577 = vmatpush.bf16.msrb.mxu0 %v3763_v29  ;;  %1840 = vmatmul.bf16.vlgmr.msra.gmra.mxu1 %v3050_v5 }
 0x502   : > { %1984 = vmatpush.bf16.msrb.mxu1 %v3763_v29  ;;  %1799 = vmatpush.bf16.msrb.mxu2 %v3049_v37 }
 0x505   : > { %1578 = vmatpush.bf16.msrb.mxu0 %v3770_v10 }
 0x506   : > { %1985 = vmatpush.bf16.msrb.mxu1 %v3770_v10 }
 0x509   : > { %1579 = vmatpush.bf16.msrb.mxu0 %v3776_v19 }
 0x50a   : > { %1986 = vmatpush.bf16.msrb.mxu1 %v3776_v19 }
 0x50d   : > { %1580 = vmatpush.bf16.msrb.mxu0 %v3782_v40 }
 0x50e   : > { %1987 = vmatpush.bf16.msrb.mxu1 %v3782_v40 }
 0x510   : > { %1550 = vmatmul.bf16.gmra.mxu0 %v3039_v42  ;;  %1693 = vmatmul.bf16.gmra.mxu2 %v3045_v47 }
 0x511   : > { %1581 = vmatpush.bf16.msrb.mxu0 %v3788_v25  ;;  %1845 = vmatmul.bf16.gmra.mxu1 %v3051_v50 }
 0x512   : > { %1988 = vmatpush.bf16.msrb.mxu1 %v3788_v25 }
 0x515   : > { %1582 = vmatpush.bf16.msrb.mxu0 %v3797_v32 }
 0x516   : > { %1989 = vmatpush.bf16.msrb.mxu1 %v3797_v32 }
 0x519   : > { %1583 = vmatpush.bf16.msrb.mxu0 %v3806_v44 }
 0x51a   : > { %1990 = vmatpush.bf16.msrb.mxu1 %v3806_v44 }
 0x51d   : > { %1584 = vmatpush.bf16.msrb.mxu0 %v3812_v34 }
 0x51e   : > { %1991 = vmatpush.bf16.msrb.mxu1 %v3812_v34 }
 0x520   : > { %1585 = vmatmul.bf16.vlgmr.msrb.gmra.mxu0 %v3041_v46 }
 0x521   : > { %1651 = vmatpush.bf16.msra.mxu0 %v3040_v43  ;;  %1992 = vmatmul.bf16.vlgmr.msrb.gmra.mxu1 %v3056_v20 }
 0x522   : > { %2136 = vmatpush.bf16.msra.mxu1 %v3763_v29 }
 0x525   : > { %1756 = vmatpush.bf16.msrb.mxu0 %v3763_v29 }
 0x526   : > { %2137 = vmatpush.bf16.msra.mxu1 %v3770_v10 }
 0x529   : > { %1757 = vmatpush.bf16.msrb.mxu0 %v3770_v10 }
 0x52a   : > { %2138 = vmatpush.bf16.msra.mxu1 %v3776_v19 }
 0x52d   : > { %1758 = vmatpush.bf16.msrb.mxu0 %v3776_v19 }
 0x52e   : > { %2139 = vmatpush.bf16.msra.mxu1 %v3782_v40 }
 0x530   : > { %1590 = vmatmul.bf16.gmra.mxu0 %v3042_v35 }
 0x531   : > { %1759 = vmatpush.bf16.msrb.mxu0 %v3782_v40  ;;  %1997 = vmatmul.bf16.gmra.mxu1 %v3057_v58 }
 0x532   : > { %2140 = vmatpush.bf16.msra.mxu1 %v3788_v25 }
 0x535   : > { %1760 = vmatpush.bf16.msrb.mxu0 %v3788_v25 }
 0x536   : > { %2141 = vmatpush.bf16.msra.mxu1 %v3797_v32 }
 0x539   : > { %1761 = vmatpush.bf16.msrb.mxu0 %v3797_v32 }
 0x53a   : > { %2142 = vmatpush.bf16.msra.mxu1 %v3806_v44 }
 0x53d   : > { %1762 = vmatpush.bf16.msrb.mxu0 %v3806_v44 }
 0x53e   : > { %2143 = vmatpush.bf16.msra.mxu1 %v3812_v34 }
 0x541   : > { %1763 = vmatpush.bf16.msrb.mxu0 %v3812_v34  ;;  %2144 = vmatmul.bf16.vlgmr.msra.gmra.mxu1 %v3062_v18 }
 0x551   : > { %2149 = vmatmul.bf16.gmra.mxu1 %v3063_v13 }
 0x57d   : > { %v1546_v49 = vpop.f32.mrf.mxu0 }
 0x57e   : > { %v1841_v27 = vpop.f32.mrf.mxu1 }
 0x583   : > { %v1689_v60 = vpop.f32.mrf.mxu2 }
 0x585   : > { %v1548_v23 = vpop.f32.mrf.mxu0 }
 0x586   : > { %v1558_v24 = vpack.c.bf16 %v1548_v23, %v1546_v49  ;;  %v1843_v28 = vpop.f32.mrf.mxu1 }
 0x587   : > { %v1854_v30 = vpack.c.bf16 %v1843_v28, %v1841_v27 }
 0x588   : > { %2820 = vmatmul.msk.bf16.vlgmr.msra.gmra.mxu0 %vm1380_vm8, %v1558_v24 }
 0x589   : > { %1908 = vmatpush.bf16.msra.mxu0 %v3763_v29 }
 0x58b   : > { %v1691_v0 = vpop.f32.mrf.mxu2 }
 0x58c   : > { %v1702_v4 = vpack.c.bf16 %v1691_v0, %v1689_v60 }
 0x58d   : > { %1909 = vmatpush.bf16.msra.mxu0 %v3770_v10  ;;  %v1551_v51 = vpop.f32.mrf.mxu0 }
 0x58e   : > { %v1846_v12 = vpop.f32.mrf.mxu1 }
 0x591   : > { %1910 = vmatpush.bf16.msra.mxu0 %v3776_v19 }
 0x593   : > { %v1694_v9 = vpop.f32.mrf.mxu2 }
 0x595   : > { %1911 = vmatpush.bf16.msra.mxu0 %v3782_v40  ;;  %v1553_v52 = vpop.f32.mrf.mxu0 }
 0x596   : > { %v1559_v53 = vpack.c.bf16 %v1553_v52, %v1551_v51  ;;  %v1848_v11 = vpop.f32.mrf.mxu1  ;;  %v3061_v52 = vld [vmem:[%s4002_s7 + $0x38] sm:$0xff] }
 0x597   : > { %v1855_v38 = vpack.c.bf16 %v1848_v11, %v1846_v12 }
 0x598   : > { %2821 = vmatmul.msk.bf16.gmra.mxu0 %vm1380_vm8, %v1559_v53 }
 0x599   : > { %1912 = vmatpush.bf16.msra.mxu0 %v3788_v25 }
 0x59b   : > { %v1696_v16 = vpop.f32.mrf.mxu2 }
 0x59c   : > { %v1703_v14 = vpack.c.bf16 %v1696_v16, %v1694_v9 }
 0x59d   : > { %1913 = vmatpush.bf16.msra.mxu0 %v3797_v32  ;;  %v1586_v54 = vpop.f32.mrf.mxu0 }
 0x5a1   : > { %1914 = vmatpush.bf16.msra.mxu0 %v3806_v44 }
 0x5a5   : > { %1915 = vmatpush.bf16.msra.mxu0 %v3812_v34  ;;  %v1588_v56 = vpop.f32.mrf.mxu0 }
 0x5a6   : > { %v1599_v57 = vpack.c.bf16 %v1588_v56, %v1586_v54 }
 0x5a8   : > { %2814 = vmatmul.msk.bf16.vlgmr.msrb.gmra.mxu3 %vm1380_vm8, %v1599_v57  ;;  %1764 = vmatmul.bf16.vlgmr.msrb.gmra.mxu0 %v3047_v21 }
 0x5a9   : > { %2060 = vmatpush.bf16.msrb.mxu0 %v3763_v29  ;;  %v3052_v29 = vld [vmem:[%s4002_s7 + $0x20] sm:$0xff] }
 0x5aa   : > { %1875 = vmatpush.bf16.msrb.mxu3 %v3052_v29 }
 0x5ad   : > { %2061 = vmatpush.bf16.msrb.mxu0 %v3770_v10  ;;  %v1591_v59 = vpop.f32.mrf.mxu0 }
 0x5b1   : > { %2062 = vmatpush.bf16.msrb.mxu0 %v3776_v19  ;;  %v1993_v19 = vpop.f32.mrf.mxu1 }
 0x5b5   : > { %2063 = vmatpush.bf16.msrb.mxu0 %v3782_v40  ;;  %v1593_v17 = vpop.f32.mrf.mxu0 }
 0x5b6   : > { %v1600_v62 = vpack.c.bf16 %v1593_v17, %v1591_v59 }
 0x5b8   : > { %2815 = vmatmul.msk.bf16.gmra.mxu3 %vm1380_vm8, %v1600_v62  ;;  %1769 = vmatmul.bf16.gmra.mxu0 %v3048_v61 }
 0x5b9   : > { %2064 = vmatpush.bf16.msrb.mxu0 %v3788_v25  ;;  %v1995_v40 = vpop.f32.mrf.mxu1  ;;  %v3055_v25 = vld [vmem:[%s4002_s7 + $0x28] sm:$0xff] }
 0x5ba   : > { %v2006_v41 = vpack.c.bf16 %v1995_v40, %v1993_v19  ;;  %1951 = vmatpush.bf16.msra.mxu2 %v3055_v25 }
 0x5bd   : > { %2065 = vmatpush.bf16.msrb.mxu0 %v3797_v32 }
 0x5c1   : > { %2066 = vmatpush.bf16.msrb.mxu0 %v3806_v44  ;;  %v1998_v2 = vpop.f32.mrf.mxu1 }
 0x5c5   : > { %2067 = vmatpush.bf16.msrb.mxu0 %v3812_v34 }
 0x5c8   : > { %2836 = vmatmul.msk.bf16.vlgmr.msra.gmra.mxu3 %vm1380_vm8, %v1702_v4  ;;  %1916 = vmatmul.bf16.vlgmr.msra.gmra.mxu0 %v3053_v6 }
 0x5c9   : > { %2027 = vmatpush.bf16.msra.mxu3 %v3058_v8  ;;  %v2000_v44 = vpop.f32.mrf.mxu1 }
 0x5ca   : > { %v2007_v34 = vpack.c.bf16 %v2000_v44, %v1998_v2 }
 0x5d1   : > { %v2145_v43 = vpop.f32.mrf.mxu1 }
 0x5d8   : > { %2837 = vmatmul.msk.bf16.gmra.mxu3 %vm1380_vm8, %v1703_v14  ;;  %1921 = vmatmul.bf16.gmra.mxu0 %v3054_v15 }
 0x5d9   : > { %v2147_v49 = vpop.f32.mrf.mxu1 }
 0x5da   : > { %v2158_v23 = vpack.c.bf16 %v2147_v49, %v2145_v43 }
 0x5e1   : > { %v2150_v53 = vpop.f32.mrf.mxu1 }
 0x5e8   : > { %2068 = vmatmul.bf16.vlgmr.msrb.gmra.mxu0 %v3059_v22  ;;  %2868 = vmatmul.msk.bf16.vlgmr.msrb.gmra.mxu3 %vm1380_vm8, %v1854_v30 }
 0x5e9   : > { %2179 = vmatpush.bf16.msrb.mxu3 %v3064_v48  ;;  %v2152_v56 = vpop.f32.mrf.mxu1 }
 0x5ea   : > { %v2159_v57 = vpack.c.bf16 %v2152_v56, %v2150_v53 }
 0x5f8   : > { %2073 = vmatmul.bf16.gmra.mxu0 %v3060_v26  ;;  %2869 = vmatmul.msk.bf16.gmra.mxu3 %vm1380_vm8, %v1855_v38 }
 0x605   : > { %v1653_v36 = vpop.f32.mrf.mxu0 }
 0x608   : > { %2900 = vmatmul.msk.bf16.vlgmr.msra.gmra.mxu3 %vm1380_vm8, %v2006_v41 }
 0x60d   : > { %v1655_v10 = vpop.f32.mrf.mxu0 }
 0x615   : > { %v1658_v39 = vpop.f32.mrf.mxu0 }
 0x618   : > { %2901 = vmatmul.msk.bf16.gmra.mxu3 %vm1380_vm8, %v2007_v34  ;;  %v3068_v34 = vld [vmem:[%s4003_s11 + $0x18] sm:$0xff] }
 0x61d   : > { %v1660_v7 = vpop.f32.mrf.mxu0 }
 0x625   : > { %v1765_v3 = vpop.f32.mrf.mxu0 }
 0x628   : > { %2932 = vmatmul.msk.bf16.vlgmr.msrb.gmra.mxu3 %vm1380_vm8, %v2158_v23 }
 0x62b   : > { %v1622_v31 = vpop.f32.mrf.mxu3 }
 0x62c   : > { %v1654_v32 = vadd.f32 %v1653_v36, %v1622_v31 }
 0x62d   : > { %v1767_v33 = vpop.f32.mrf.mxu0 }
 0x62e   : > { %v1778_v1 = vpack.c.bf16 %v1767_v33, %v1765_v3 }
 0x630   : > { %2852 = vmatmul.msk.bf16.vlgmr.msrb.gmra.mxu2 %vm1380_vm8, %v1778_v1 }
 0x631   : > { %2103 = vmatpush.bf16.msrb.mxu2 %v3061_v52 }
 0x633   : > { %v1624_v63 = vpop.f32.mrf.mxu3 }
 0x634   : > { %v1656_v5 = vadd.f32 %v1655_v10, %v1624_v63  ;;  %v3067_v63 = vld [vmem:[%s4003_s11 + $0x10] sm:$0xff] }
 0x635   : > { %v1770_v42 = vpop.f32.mrf.mxu0 }
 0x638   : > { %2933 = vmatmul.msk.bf16.gmra.mxu3 %vm1380_vm8, %v2159_v57  ;;  %v3169_v57 = vld [vmem:[%s4004_s25] ss:$0 sm:$0xff]  ;;  %s967_s25 = scalar_lea.vmem %s4017_s26, %s4024_s0 }
 0x63b   : > { %v1627_v45 = vpop.f32.mrf.mxu3 }
 0x63c   : > { %v1659_v46 = vadd.f32 %v1658_v39, %v1627_v45 }
 0x63d   : > { %v1772_v47 = vpop.f32.mrf.mxu0 }
 0x63e   : > { %v1779_v35 = vpack.c.bf16 %v1772_v47, %v1770_v42  ;;  %v3066_v42 = vld [vmem:[%s4003_s11 + $0x8] sm:$0xff] }
 0x640   : > { %2853 = vmatmul.msk.bf16.gmra.mxu2 %vm1380_vm8, %v1779_v35 }
 0x643   : > { %v1629_v24 = vpop.f32.mrf.mxu3 }
 0x644   : > { %v1661_v50 = vadd.f32 %v1660_v7, %v1629_v24 }
 0x645   : > { %v1917_v51 = vpop.f32.mrf.mxu0 }
 0x64b   : > { %v1725_v20 = vpop.f32.mrf.mxu3 }
 0x64c   : > { %v1735_v54 = vadd.f32 %v1725_v20, %v1654_v32 }
 0x64d   : > { %v1919_v21 = vpop.f32.mrf.mxu0 }
 0x64e   : > { %v1930_v55 = vpack.c.bf16 %v1919_v21, %v1917_v51 }
 0x650   : > { %2884 = vmatmul.msk.bf16.vlgmr.msra.gmra.mxu2 %vm1380_vm8, %v1930_v55 }
 0x651   : > { %2266 = vmatpush.bf16.msra.mxu2 %v3068_v34  ;;  %v3031_v34 = vld [vmem:[%s4010_s6] sm:$0xff] }
 0x653   : > { %v1727_v58 = vpop.f32.mrf.mxu3 }
 0x654   : > { %v1736_v59 = vadd.f32 %v1727_v58, %v1656_v5 }
 0x655   : > { %v1922_v60 = vpop.f32.mrf.mxu0  ;;  %2267 = vmatpush.bf16.msra.mxu2 %v3067_v63  ;;  %v3032_v63 = vld [vmem:[%s4010_s6 + $0x8] sm:$0xff] }
 0x659   : > { %2268 = vmatpush.bf16.msra.mxu2 %v3066_v42  ;;  %v3071_v42 = vld [vmem:[%s4009_s21 + $0x8] sm:$0xff] }
 0x65b   : > { %v1730_v61 = vpop.f32.mrf.mxu3 }
 0x65c   : > { %v1737_v17 = vadd.f32 %v1730_v61, %v1659_v46 }
 0x65d   : > { %v1924_v62 = vpop.f32.mrf.mxu0 }
 0x65e   : > { %v1931_v18 = vpack.c.bf16 %v1924_v62, %v1922_v60 }
 0x660   : > { %2885 = vmatmul.msk.bf16.gmra.mxu2 %vm1380_vm8, %v1931_v18 }
 0x663   : > { %v1732_v0 = vpop.f32.mrf.mxu3 }
 0x664   : > { %v1738_v4 = vadd.f32 %v1732_v0, %v1661_v50 }
 0x665   : > { %v2069_v6 = vpop.f32.mrf.mxu0 }
 0x66b   : > { %v1877_v22 = vpop.f32.mrf.mxu3 }
 0x66d   : > { %v2071_v9 = vpop.f32.mrf.mxu0 }
 0x66e   : > { %v2082_v13 = vpack.c.bf16 %v2071_v9, %v2069_v6  ;;  %v3906_v6 = vld [vmem:[%s4005_s23] sm:$0x1] }
 0x66f   : > { %v3065_v9 = vld [vmem:[%s4003_s11] sm:$0xff] }
 0x670   : > { %2916 = vmatmul.msk.bf16.vlgmr.msrb.gmra.mxu2 %vm1380_vm8, %v2082_v13 }
 0x671   : > { %2269 = vmatpush.bf16.msra.mxu2 %v3065_v9 }
 0x673   : > { %v1879_v26 = vpop.f32.mrf.mxu3 }
 0x675   : > { %v2074_v16 = vpop.f32.mrf.mxu0 }
 0x67b   : > { %v1882_v28 = vpop.f32.mrf.mxu3 }
 0x67d   : > { %v2076_v14 = vpop.f32.mrf.mxu0 }
 0x67e   : > { %v2083_v15 = vpack.c.bf16 %v2076_v14, %v2074_v16 }
 0x680   : > { %2917 = vmatmul.msk.bf16.gmra.mxu2 %vm1380_vm8, %v2083_v15  ;;  %v3069_v15 = vld [vmem:[%s4006_s1] sm:$0xff] }
 0x681   : > { %2299 = vmatpush.bf16.msrb.mxu1 %v3069_v15 }
 0x683   : > { %v1884_v12 = vpop.f32.mrf.mxu3 }
 0x68b   : > { %v2029_v19 = vpop.f32.mrf.mxu3 }
 0x693   : > { %v2031_v8 = vpop.f32.mrf.mxu3 }
 0x69b   : > { %v2034_v41 = vpop.f32.mrf.mxu3 }
 0x6a3   : > { %v2036_v2 = vpop.f32.mrf.mxu3 }
 0x6ab   : > { %v2181_v32 = vpop.f32.mrf.mxu3 }
 0x6b3   : > { %v1801_v27 = vpop.f32.mrf.mxu2  ;;  %v2183_v1 = vpop.f32.mrf.mxu3 }
 0x6b4   : > { %v1811_v29 = vadd.f32 %v1801_v27, %v1735_v54 }
 0x6b6   : > { %v1887_v30 = vadd.f32 %v1877_v22, %v1811_v29  ;;  %v3170_v22 = vld [vmem:[%s4007_s2] ss:$0 sm:$0xff] }
 0x6bb   : > { %v1803_v36 = vpop.f32.mrf.mxu2  ;;  %v2186_v45 = vpop.f32.mrf.mxu3 }
 0x6bc   : > { %v1812_v37 = vadd.f32 %v1803_v36, %v1736_v59  ;;  %v3171_v36 = vld [vmem:[%s4008_s27] ss:$0 sm:$0xff] }
 0x6be   : > { %v1888_v10 = vadd.f32 %v1879_v26, %v1812_v37 }
 0x6c3   : > { %v1806_v11 = vpop.f32.mrf.mxu2  ;;  %v2188_v56 = vpop.f32.mrf.mxu3 }
 0x6c4   : > { %v1813_v38 = vadd.f32 %v1806_v11, %v1737_v17 }
 0x6c6   : > { %v1889_v39 = vadd.f32 %v1882_v28, %v1813_v38 }
 0x6cb   : > { %v1808_v7 = vpop.f32.mrf.mxu2 }
 0x6cc   : > { %v1814_v5 = vadd.f32 %v1808_v7, %v1738_v4 }
 0x6ce   : > { %v1890_v35 = vadd.f32 %v1884_v12, %v1814_v5  ;;  %v3072_v5 = vld [vmem:[%s4009_s21 + $0x10] sm:$0xff] }
 0x6d3   : > { %v1953_v40 = vpop.f32.mrf.mxu2 }
 0x6d4   : > { %v1963_v48 = vadd.f32 %v1953_v40, %v1887_v30 }
 0x6d6   : > { %v2039_v51 = vadd.f32 %v2029_v19, %v1963_v48 }
 0x6db   : > { %v1955_v3 = vpop.f32.mrf.mxu2 }
 0x6dc   : > { %v1964_v47 = vadd.f32 %v1955_v3, %v1888_v10 }
 0x6de   : > { %v2040_v24 = vadd.f32 %v2031_v8, %v1964_v47  ;;  %v3073_v8 = vld [vmem:[%s4009_s21 + $0x18] sm:$0xff] }
 0x6df   : > { %2415 = vmatpush.bf16.msrb.mxu2 %v3073_v8 }
 0x6e3   : > { %v1958_v25 = vpop.f32.mrf.mxu2  ;;  %2416 = vmatpush.bf16.msrb.mxu2 %v3072_v5 }
 0x6e4   : > { %v1965_v43 = vadd.f32 %v1958_v25, %v1889_v39 }
 0x6e6   : > { %v2041_v23 = vadd.f32 %v2034_v41, %v1965_v43  ;;  %v3070_v43 = vld [vmem:[%s4009_s21] sm:$0xff] }
 0x6e7   : > { %2417 = vmatpush.bf16.msrb.mxu2 %v3071_v42 }
 0x6eb   : > { %v1960_v31 = vpop.f32.mrf.mxu2  ;;  %2418 = vmatpush.bf16.msrb.mxu2 %v3070_v43 }
 0x6ec   : > { %v1966_v49 = vadd.f32 %v1960_v31, %v1890_v35 }
 0x6ee   : > { %v2042_v53 = vadd.f32 %v2036_v2, %v1966_v49 }
 0x6f3   : > { %v2105_v33 = vpop.f32.mrf.mxu2 }
 0x6f4   : > { %v2115_v54 = vadd.f32 %v2105_v33, %v2039_v51 }
 0x6f6   : > { %v2191_v60 = vadd.f32 %v2181_v32, %v2115_v54 }
 0x6f8   : > { %v2199_v0 = vadd.f32 %v3169_v57, %v2191_v60  ;;  %v2483_v60 = vld [vmem:[%s4013_s22] sm:$0xf] }
 0x6fb   : > { %v2107_v44 = vpop.f32.mrf.mxu2 }
 0x6fc   : > { %v2116_v52 = vadd.f32 %v2107_v44, %v2040_v24 }
 0x6fe   : > { %v2192_v58 = vadd.f32 %v2183_v1, %v2116_v52 }
 0x700   : > { %v3900_v62 = vadd.f32 %v3169_v57, %v2192_v58 }
 0x702   : > { %v2203_v4 = vpack.c.bf16 %v3900_v62, %v2199_v0 }
 0x703   : > { %v2110_v46 = vpop.f32.mrf.mxu2 }
 0x704   : > { %v2117_v50 = vadd.f32 %v2110_v46, %v2041_v23 }
 0x706   : > { %v2193_v21 = vadd.f32 %v2186_v45, %v2117_v50 }
 0x708   : > { %v3896_v61 = vadd.f32 %v3169_v57, %v2193_v21  ;;  %v3172_v21 = vld [vmem:[%s4012_s20] ss:$0 sm:$0xff] }
 0x70b   : > { %v2112_v20 = vpop.f32.mrf.mxu2 }
 0x70c   : > { %v2118_v55 = vadd.f32 %v2112_v20, %v2042_v53  ;;  %v3075_v53 = vld [vmem:[%s4011_s9 + $0x8] sm:$0xff] }
 0x70d   : > { %2475 = vmatpush.bf16.msra.mxu1 %v3075_v53 }
 0x70e   : > { %v2194_v59 = vadd.f32 %v2188_v56, %v2118_v55 }
 0x710   : > { %v3898_v17 = vadd.f32 %v3169_v57, %v2194_v59 }
 0x712   : > { %v2204_v18 = vpack.c.bf16 %v3898_v17, %v3896_v61 }
 0x714   : > { %2214 = vmatpush.bf16.msra.mxu0 %v2204_v18  ;;  %v3074_v18 = vld [vmem:[%s4011_s9] sm:$0xff] }
 0x715   : > { %2476 = vmatpush.bf16.msra.mxu1 %v3074_v18 }
 0x718   : > { %2215 = vmatpush.bf16.msra.mxu0 %v2203_v4 }
 0x71b   : > { %2934 = vmatmul.msk.bf16.vlgmr.msra.gmra.mxu0 %vm1049_vm0, %v3906_v6 }
 0x798   : > { %v2217_v13 = vpop.f32.mrf.mxu0 }
 0x799   : > { %v2229_v16 = vpack.c.bf16 %v2217_v13, %v2217_v13  ;;  %v3173_v13 = vld [vmem:[%s4014_s28] ss:$0 sm:$0xff] }
 0x79b   : > { %2951 = vmatmul.msk.bf16.vlgmr.msra.gmra.mxu2 %vm2258_vm3, %v2229_v16 }
 0x7a0   : > { %v2219_v14 = vpop.f32.mrf.mxu0 }
 0x81e   : > { %v2271_v26 = vpop.f32.mrf.mxu2 }
 0x81f   : > { %v2272_v27 = vadd.f32 %v3170_v22, %v2271_v26 }
 0x821   : > { %v2275_v28 = vmax.f32 %v2272_v27, 0.0  ;;  %v3077_v27 = vld [vmem:[%s4015_s12 + $0x8] sm:$0xff] }
 0x823   : > { %v2278_v29 = vpack.c.bf16 %v2275_v28, %v2275_v28  ;;  %v3079_v28 = vld [vmem:[%s4015_s12 + $0x18] sm:$0xff] }
 0x825   : > { %2956 = vmatmul.msk.bf16.vlgmr.msrb.gmra.mxu1 %vm1380_vm8, %v2278_v29  ;;  %v3076_v29 = vld [vmem:[%s4015_s12] sm:$0xff] }
 0x826   : > { %v2273_v30 = vpop.f32.mrf.mxu2  ;;  %2562 = vmatpush.bf16.msrb.mxu1 %v3079_v28 }
 0x827   : > { %v3078_v30 = vld [vmem:[%s4015_s12 + $0x10] sm:$0xff] }
 0x82a   : > { %2563 = vmatpush.bf16.msrb.mxu1 %v3078_v30 }
 0x8a2   : > { %v2301_v37 = vpop.f32.mrf.mxu1 }
 0x8a3   : > { %v2302_v12 = vadd.f32 %v3171_v36, %v2301_v37 }
 0x8a5   : > { %v2957_v10 = vmul.f32 -1.442695, %v2302_v12 }
 0x8a7   : > { %3183 = vpow2.f32 %v2957_v10 }
 0x8aa   : > { %v2303_v11 = vpop.f32.mrf.mxu1 }
 0x8ad   : > { %v3184_v38 = vpop.eup %3183 }
 0x8ae   : > { %v2308_v39 = vadd.f32 1.0, %v3184_v38 }
 0x8b0   : > { %3185 = vrcp.f32 %v2308_v39  ;;  %v2320_v41 = vand.u32 2147483648, %v2308_v39  ;;  %v2318_v25 = vand.u32 2147483647, %v2308_v39  ;;  %vm2314_vm5 = vweird.f32 %v2308_v39 }
 0x8b2   : > { %v2321_v31 = vor.u32 1.1754944e-38, %v2320_v41  ;;  %vm2319_vm8 = vcmp.eq.f32.partialorder %v2318_v25, 8.507059e+37 }
 0x8b6   : > { %v3186_v19 = vpop.eup %3185 }
 0x8b7   : > { %v2310_v7 = vmul.f32 %v3186_v19, %v2308_v39  ;;  %vm2315_vm4 = vweird.f32 %v3186_v19 }
 0x8b8   : > { %vm2316_vm6 = vmor %vm2314_vm5, %vm2315_vm4 }
 0x8b9   : > { %v2311_v40 = vsub.f32 1.0, %v2310_v7 }
 0x8bb   : > { %v2312_v3 = vmul.f32 %v3186_v19, %v2311_v40 }
 0x8bd   : > { %v2313_v2 = vadd.f32 %v3186_v19, %v2312_v3 }
 0x8bf   : > { %v2317_v32 = vsel %vm2316_vm6, %v3186_v19, %v2313_v2 }
 0x8c0   : > { %v2322_v33 = vsel %vm2319_vm8, %v2321_v31, %v2317_v32 }
 0x8c1   : > { %v2324_v1 = vpack.c.bf16 %v2322_v33, %v2322_v33 }
 0x8c3   : > { %v2342_v44 = vsel %vm1179_vm7, %v2324_v1, 0 }
 0x8c4   : > { %2351 = vmatpush.bf16.msrb.mxu0 %v2342_v44 }
 0x8c7   : > { %2966 = vmatmul.msk.bf16.vlgmr.msrb.gmra.mxu0 %vm1154_vm9, %v3031_v34 }
 0x8c8   : > { %2589 = vmatpush.bf16.msra.mxu0 %v3077_v27 }
 0x8cc   : > { %2590 = vmatpush.bf16.msra.mxu0 %v3076_v29 }
 0x8d7   : > { %2967 = vmatmul.msk.bf16.gmra.mxu0 %vm1154_vm9, %v3032_v63  ;;  %v2596_v63 = vld [vmem:[#allocation2] sm:$0x1] }
 0x944   : > { %v2353_v45 = vpop.f32.mrf.mxu0 }
 0x945   : > { %v2363_v47 = vmul.f32 %v2353_v45, %v2199_v0 }
 0x94c   : > { %v2355_v46 = vpop.f32.mrf.mxu0 }
 0x94d   : > { %v2364_v35 = vmul.f32 %v2355_v46, %v3900_v62 }
 0x94f   : > { %v2375_v48 = vpack.c.bf16 %v2364_v35, %v2363_v47 }
 0x951   : > { %2984 = vmatmul.msk.bf16.vlgmr.msrb.gmra.mxu2 %vm2258_vm3, %v2375_v48 }
 0x954   : > { %v2358_v49 = vpop.f32.mrf.mxu0 }
 0x955   : > { %v2365_v24 = vmul.f32 %v2358_v49, %v3896_v61 }
 0x95c   : > { %v2360_v23 = vpop.f32.mrf.mxu0 }
 0x95d   : > { %v2366_v50 = vmul.f32 %v2360_v23, %v3898_v17  ;;  %v2493_v17 = vsel %vm1077_vm1, %v2483_v60, 0 }
 0x95f   : > { %v2376_v51 = vpack.c.bf16 %v2366_v50, %v2365_v24 }
 0x961   : > { %2985 = vmatmul.msk.bf16.gmra.mxu2 %vm2258_vm3, %v2376_v51 }
 0x9d4   : > { %v2420_v52 = vpop.f32.mrf.mxu2 }
 0x9d5   : > { %v2421_v61 = vadd.f32 %v3172_v21, %v2420_v52 }
 0x9dc   : > { %v2422_v20 = vpop.f32.mrf.mxu2 }
 0x9dd   : > { %v2423_v58 = vadd.f32 %v3172_v21, %v2422_v20 }
 0x9df   : > { %v2430_v62 = vpack.c.bf16 %v2423_v58, %v2421_v61 }
 0x9e4   : > { %v2425_v54 = vpop.f32.mrf.mxu2 }
 0x9e5   : > { %v2426_v56 = vadd.f32 %v3172_v21, %v2425_v54 }
 0x9ec   : > { %v2427_v55 = vpop.f32.mrf.mxu2 }
 0x9ed   : > { %v2428_v57 = vadd.f32 %v3172_v21, %v2427_v55 }
 0x9ef   : > { %v2431_v59 = vpack.c.bf16 %v2428_v57, %v2426_v56 }
 0x9f1   : > { %2438 = vmatpush.bf16.msra.mxu3 %v2431_v59 }
 0x9f5   : > { %2439 = vmatpush.bf16.msra.mxu3 %v2430_v62 }
 0x9f8   : > { %2986 = vmatmul.msk.bf16.vlgmr.msra.gmra.mxu3 %vm1049_vm0, %v3906_v6  ;;  %v3174_v6 = vld [vmem:[%s4016_s4] ss:$0 sm:$0xff] }
 0x9f9   : > { %2502 = vmatpush.bf16.msrb.mxu3 %v2493_v17 }
 0xa7b   : > { %v2441_v0 = vpop.f32.mrf.mxu3 }
 0xa7c   : > { %v2449_v4 = vpack.c.bf16 %v2441_v0, %v2441_v0 }
 0xa7e   : > { %2995 = vmatmul.msk.bf16.vlgmr.msra.gmra.mxu1 %vm1049_vm0, %v2449_v4 }
 0xa83   : > { %v2443_v9 = vpop.f32.mrf.mxu3 }
 0xafb   : > { %v2478_v16 = vpop.f32.mrf.mxu1 }
 0xafc   : > { %v2479_v14 = vadd.f32 %v3173_v13, %v2478_v16 }
 0xafe   : > { %v2482_v15 = vmax.f32 %v2479_v14, 0.0 }
 0xb00   : > { %v2484_v22 = vpack.c.bf16 %v2482_v15, %v2482_v15 }
 0xb02   : > { %2996 = vmatmul.msk.bf16.vlgmr.msrb.gmra.mxu3 %vm1073_vm2, %v2484_v22 }
 0xb03   : > { %v2480_v26 = vpop.f32.mrf.mxu1 }
 0xb85   : > { %v2504_v36 = vpop.f32.mrf.mxu3 }
 0xb86   : > { %v2505_v37 = vadd.f32 %v3174_v6, %v2504_v36 }
 0xb88   : > { %v2997_v12 = vmul.f32 -1.442695, %v2505_v37 }
 0xb8a   : > { %3187 = vpow2.f32 %v2997_v12 }
 0xb8d   : > { %v2506_v10 = vpop.f32.mrf.mxu3 }
 0xb90   : > { %v3188_v11 = vpop.eup %3187 }
 0xb91   : > { %v2511_v38 = vadd.f32 1.0, %v3188_v11 }
 0xb93   : > { %3189 = vrcp.f32 %v2511_v38  ;;  %v2523_v8 = vand.u32 2147483648, %v2511_v38  ;;  %v2521_v41 = vand.u32 2147483647, %v2511_v38  ;;  %vm2517_vm2 = vweird.f32 %v2511_v38 }
 0xb95   : > { %v2524_v25 = vor.u32 1.1754944e-38, %v2523_v8  ;;  %vm2522_vm9 = vcmp.eq.f32.partialorder %v2521_v41, 8.507059e+37 }
 0xb99   : > { %v3190_v39 = vpop.eup %3189 }
 0xb9a   : > { %v2513_v19 = vmul.f32 %v3190_v39, %v2511_v38  ;;  %vm2518_vm1 = vweird.f32 %v3190_v39 }
 0xb9b   : > { %vm2519_vm7 = vmor %vm2517_vm2, %vm2518_vm1 }
 0xb9c   : > { %v2514_v7 = vsub.f32 1.0, %v2513_v19 }
 0xb9e   : > { %v2515_v40 = vmul.f32 %v3190_v39, %v2514_v7 }
 0xba0   : > { %v2516_v3 = vadd.f32 %v3190_v39, %v2515_v40 }
 0xba2   : > { %v2520_v2 = vsel %vm2519_vm7, %v3190_v39, %v2516_v3 }
 0xba3   : > { %v2525_v31 = vsel %vm2522_vm9, %v2524_v25, %v2520_v2 }
 0xba4   : > { %v2527_v32 = vmul.f32 %v2525_v31, %v2441_v0 }
 0xba6   : > { %v2532_v33 = vpack.c.bf16 %v2527_v32, %v2527_v32 }
 0xba8   : > { %3019 = vmatmul.msk.bf16.vlgmr.msra.gmra.mxu0 %vm1049_vm0, %v2532_v33  ;;  %v2539_v1 = vshrl.u32 %v2532_v33, 16 }
 0xbaa   : > { %3010 = vmatmul.msk.bf16.vlgmr.msrb.gmra.mxu1 %vm1049_vm0, %v2539_v1 }
 0xc25   : > { %v2592_v44 = vpop.f32.mrf.mxu0 }
 0xc27   : > { %v2565_v34 = vpop.f32.mrf.mxu1 }
 0xc28   : > { %v2593_v5 = vadd.f32 %v2592_v44, %v2565_v34 }
 0xc2a   : > { %v2597_v42 = vadd.f32 %v2596_v63, %v2593_v5 }
 0xc2c   : > { %2599 = vst.msk [vmem:[%s967_s25] sm:$0x1] %vm2598_vm10, %v2597_v42 }
 0xc2d   : > { %v2594_v43 = vpop.f32.mrf.mxu0 }
 0xc2f   : > { %v2567_v45 = vpop.f32.mrf.mxu1 }
 0xc30 PF: > { %s4018_s23 = smov %s3545_s15  ;;  %p74_p4 = scmp.ge.s32.totalorder %s3529_s10, 4  }
 0xc31   : > { %s4019_s15 = smov %s3281_s16  ;;  %s4020_s16 = smov %s3285_s18 }
 0xc32   : > { %s4021_s18 = smov %s4018_s23  ;;  %s4022_s22 = smov %s3529_s10 }
 0xc33   :  { %76 = sbr.rel (!%p74_p4) target bundleno = 64 (0x40), region = 231 }
 0xc38   :  { %2617 = vsyncpa [#allocation4], 1 }
 0xc39   :  { %2619 = vsyncpa [#allocation4 + $0x1], 1 }
 0xc3a   :  { %2620 = vsyncpa [#allocation6], 1 }

</bundles_post_ra>
